<compile_context>
chip_gen: v7x
topology: tpu7x:2x2x1
jax: 0.10.0
libtpu: 0.0.40
codegen_flags: <defaults>
</compile_context>

<pallas_src>
import functools

import jax
import jax.numpy as jnp
from jax.experimental import pallas as pl
from jax.experimental.pallas import tpu as pltpu


def _round_up(v, m):
    return (v + m - 1) // m * m


def sppf_kernel(x_ref, w1t_ref, b1_ref, w2t_ref, b2_ref, o_ref, *, N, H, W):
    HW = H * W
    Lvalid = N * HW
    L = x_ref.shape[1]                                     # padded lane extent (mult of 128)

    x = x_ref[...]                                         # (Cp, L)

    # conv1: 1x1 conv (+ folded BN) + ReLU  ==  (Chp, Cp) @ (Cp, L) on the MXU
    x1 = jnp.dot(w1t_ref[...], x, preferred_element_type=jnp.float32)
    x1 = jnp.maximum(x1 + b1_ref[...], 0.0)                # (Chp, L), lane-dense, >= 0

    # Lane-validity masks, shape (1, L), built once and broadcast at use.
    # A mask says: "the +/-s neighbour of this centre lane lies inside the
    # same image AND inside the 5-tap window".  Cross-image wrap (batch merged
    # into lanes) and the zero-padded tail lanes are excluded.
    col = jax.lax.broadcasted_iota(jnp.int32, (1, L), 1)
    in_img = col < Lvalid
    pos = col % HW                                         # position within its image
    w_idx = pos % W
    wplus = {s: jnp.logical_and(in_img, w_idx < W - s) for s in (1, 2)}
    wminus = {s: jnp.logical_and(in_img, w_idx >= s) for s in (1, 2)}
    hplus = {s: jnp.logical_and(in_img, pos < (H - s) * W) for s in (1, 2)}
    hminus = {s: jnp.logical_and(in_img, pos >= s * W) for s in (1, 2)}

    def pool5(v):
        # Separable 5x5 max pool, stride 1, padding 2.  v >= 0 is guaranteed
        # (post-ReLU chain), so invalid neighbours are replaced with 0.0 which
        # is exact since the window always contains its own centre value.
        # roll(v, L - k) == roll(v, -k):  result[., i] = v[., i + k].
        # TODO(synk): optional log-step composite max (3 rolls/3 maxes per
        #   direction) would cut XLU pushes ~25% but needs re-derived masks.
        m = v
        for s in (1, 2):                                   # 5-tap max along W
            plus = jnp.where(wplus[s], pltpu.roll(v, shift=L - s, axis=1), 0.0)
            minus = jnp.where(wminus[s], pltpu.roll(v, shift=s, axis=1), 0.0)
            m = jnp.maximum(m, jnp.maximum(plus, minus))
        r = m
        for s in (1, 2):                                   # 5-tap max along H
            down = jnp.where(hplus[s], pltpu.roll(m, shift=L - s * W, axis=1), 0.0)
            up = jnp.where(hminus[s], pltpu.roll(m, shift=s * W, axis=1), 0.0)
            r = jnp.maximum(r, jnp.maximum(down, up))
        return r

    # SPPF pooling chain
    y1 = pool5(x1)
    y2 = pool5(y1)
    y3 = pool5(y2)

    # conv2 over the channel concat == four accumulated MXU dots (no concat)
    out = jnp.dot(w2t_ref[0], x1, preferred_element_type=jnp.float32)
    out = out + jnp.dot(w2t_ref[1], y1, preferred_element_type=jnp.float32)
    out = out + jnp.dot(w2t_ref[2], y2, preferred_element_type=jnp.float32)
    out = out + jnp.dot(w2t_ref[3], y3, preferred_element_type=jnp.float32)
    out = jnp.maximum(out + b2_ref[...], 0.0)              # (Coutp, L), lane-dense

    o_ref[...] = out.astype(o_ref.dtype)


def sppf_forward(x_nchw, w1, b1, w2, b2):
    """SPPF forward. x_nchw: (N, C, H, W) float32 -> (N, Cout, H, W)."""
    N, C, H, W = x_nchw.shape
    Ch = w1.shape[1]
    Cout = w2.shape[1]
    HW = H * W

    # Padded extents: sublanes to 8, lanes to 128.
    Cp = _round_up(C, 8)
    Chp = _round_up(Ch, 8)
    Coutp = _round_up(Cout, 8)
    Lvalid = N * HW
    L = _round_up(Lvalid, 128)

    # Channel-major, batch-merged flat spatial layout (C, N*HW) -> pad to (Cp, L).
    x_flat = jnp.transpose(x_nchw.reshape(N, C, HW), (1, 0, 2)).reshape(C, Lvalid)
    x_flat = jnp.pad(x_flat, ((0, Cp - C), (0, L - Lvalid)))

    # conv1 weights/bias: (Ch, C) -> zero-pad to (Chp, Cp); bias (Chp, 1).
    w1t = jnp.pad(jnp.transpose(w1), ((0, Chp - Ch), (0, Cp - C)))
    b1c = jnp.pad(b1.reshape(Ch, 1), ((0, Chp - Ch), (0, 0)))

    # conv2 weights split into 4 per-stage chunks (Cout, Ch) -> (4, Coutp, Chp).
    w2t = jnp.transpose(w2)                                # (Cout, 4*Ch)
    chunks = [
        jnp.pad(w2t[:, k * Ch:(k + 1) * Ch], ((0, Coutp - Cout), (0, Chp - Ch)))
        for k in range(4)
    ]
    w2t4 = jnp.stack(chunks, axis=0)                       # (4, Coutp, Chp)
    b2c = jnp.pad(b2.reshape(Cout, 1), ((0, Coutp - Cout), (0, 0)))

    kern = functools.partial(sppf_kernel, N=N, H=H, W=W)
    out = pl.pallas_call(
        kern,
        out_shape=jax.ShapeDtypeStruct((Coutp, L), x_nchw.dtype),
        grid=(1,),                                         # whole batch in one step
        in_specs=[
            pl.BlockSpec((Cp, L), lambda i: (0, 0)),
            pl.BlockSpec((Chp, Cp), lambda i: (0, 0)),
            pl.BlockSpec((Chp, 1), lambda i: (0, 0)),
            pl.BlockSpec((4, Coutp, Chp), lambda i: (0, 0, 0)),
            pl.BlockSpec((Coutp, 1), lambda i: (0, 0)),
        ],
        out_specs=pl.BlockSpec((Coutp, L), lambda i: (0, 0)),
        compiler_params=pltpu.CompilerParams(
            dimension_semantics=("arbitrary",),
            vmem_limit_bytes=32 * 1024 * 1024,
        ),
    )(x_flat, w1t, b1c, w2t4, b2c)

    # Strip padding, restore NCHW (free contiguous split after one transpose).
    out = out[:Cout, :Lvalid].reshape(Cout, N, HW)
    return jnp.transpose(out, (1, 0, 2)).reshape(N, Cout, H, W)


def _reference(x_nchw, w1, b1, w2, b2):
    """Pure-JAX reference (NCHW semantics identical to the PyTorch module)."""
    x = jnp.transpose(x_nchw, (0, 2, 3, 1))                # NHWC
    x1 = jnp.maximum(jnp.einsum("nhwc,cd->nhwd", x, w1) + b1[0], 0.0)

    def pool(v):
        return jax.lax.reduce_window(
            v, -jnp.inf, jax.lax.max,
            window_dimensions=(1, 5, 5, 1),
            window_strides=(1, 1, 1, 1),
            padding=((0, 0), (2, 2), (2, 2), (0, 0)))

    y1 = pool(x1)
    y2 = pool(y1)
    y3 = pool(y2)
    cat = jnp.concatenate([x1, y1, y2, y3], axis=-1)
    out = jnp.maximum(jnp.einsum("nhwc,cd->nhwd", cat, w2) + b2[0], 0.0)
    return jnp.transpose(out, (0, 3, 1, 2))


if __name__ == "__main__":
    # SPPF(in_channels=8, out_channels=8): hidden = 8 // 2 = 4
    N, Cin, H, W = 2, 8, 16, 16
    Ch = Cin // 2
    Cout = 8

    key = jax.random.PRNGKey(0)
    k1, k2, k3, k4, k5 = jax.random.split(key, 5)

    x = jax.random.normal(k1, (N, Cin, H, W), dtype=jnp.float32)
    # conv1: 1x1 conv weight (Cin -> Ch), BN folded into weight + bias
    w1 = 0.3 * jax.random.normal(k2, (Cin, Ch), dtype=jnp.float32)
    b1 = 0.1 * jax.random.normal(k3, (1, Ch), dtype=jnp.float32)
    # conv2: 1x1 conv weight (4*Ch -> Cout), BN folded into weight + bias
    w2 = 0.3 * jax.random.normal(k4, (4 * Ch, Cout), dtype=jnp.float32)
    b2 = 0.1 * jax.random.normal(k5, (1, Cout), dtype=jnp.float32)

    out = sppf_forward(x, w1, b1, w2, b2)
    out = jax.block_until_ready(out)

    ref = jax.block_until_ready(_reference(x, w1, b1, w2, b2))
    assert out.shape == (N, Cout, H, W), out.shape
    assert jnp.allclose(out, ref, atol=1e-4, rtol=1e-4), "mismatch vs reference"

    print("KERNEL_OK")
</pallas_src>

<mosaic_0001>
module attributes {stable_mosaic.version = 11 : i64} {
  func.func @sppf_kernel(%arg0: i32, %arg1: memref<8x512xf32, #tpu.memory_space<vmem>>, %arg2: memref<8x8xf32, #tpu.memory_space<vmem>>, %arg3: memref<8x1xf32, #tpu.memory_space<vmem>>, %arg4: memref<4x8x8xf32, #tpu.memory_space<vmem>>, %arg5: memref<8x1xf32, #tpu.memory_space<vmem>>, %arg6: memref<8x512xf32, #tpu.memory_space<vmem>>) attributes {dimension_semantics = [#tpu.dimension_semantics<arbitrary>], iteration_bounds = array<i64: 1>, scalar_prefetch = 0 : i64, scratch_operands = 0 : i64, tpu.core_type = #tpu.core_type<tc>, window_params = [{pipeline_mode = #tpu.pipeline_mode<synchronous>, transform_indices = @transform_0, window_bounds = array<i64: 8, 512>}, {pipeline_mode = #tpu.pipeline_mode<synchronous>, transform_indices = @transform_1, window_bounds = array<i64: 8, 8>}, {pipeline_mode = #tpu.pipeline_mode<synchronous>, transform_indices = @transform_2, window_bounds = array<i64: 8, 1>}, {pipeline_mode = #tpu.pipeline_mode<synchronous>, transform_indices = @transform_3, window_bounds = array<i64: 4, 8, 8>}, {pipeline_mode = #tpu.pipeline_mode<synchronous>, transform_indices = @transform_4, window_bounds = array<i64: 8, 1>}, {pipeline_mode = #tpu.pipeline_mode<synchronous>, transform_indices = @transform_5, window_bounds = array<i64: 8, 512>}]} {
    %c0 = arith.constant 0 : index
    %c0_0 = arith.constant 0 : index
    %0 = vector.load %arg1[%c0, %c0_0] : memref<8x512xf32, #tpu.memory_space<vmem>>, vector<8x512xf32>
    %c0_1 = arith.constant 0 : index
    %c0_2 = arith.constant 0 : index
    %1 = vector.load %arg2[%c0_1, %c0_2] : memref<8x8xf32, #tpu.memory_space<vmem>>, vector<8x8xf32>
    %cst = arith.constant dense<0.000000e+00> : vector<8x512xf32>
    %2 = tpu.matmul %1, %0, %cst {dimension_numbers = #tpu.dot_dimension_numbers<[1], [0], [0], [1], [0, 0, 1, 1], [], []>} : vector<8x8xf32>, vector<8x512xf32>, vector<8x512xf32> -> vector<8x512xf32>
    %c0_3 = arith.constant 0 : index
    %c0_4 = arith.constant 0 : index
    %3 = vector.load %arg3[%c0_3, %c0_4] : memref<8x1xf32, #tpu.memory_space<vmem>>, vector<8x1xf32>
    %4 = vector.broadcast %3 : vector<8x1xf32> to vector<8x512xf32>
    %5 = arith.addf %2, %4 : vector<8x512xf32>
    %cst_5 = arith.constant 0.000000e+00 : f32
    %6 = vector.broadcast %cst_5 : f32 to vector<8x512xf32>
    %7 = arith.maximumf %5, %6 : vector<8x512xf32>
    %8 = tpu.iota {dimensions = array<i32: 1>} : vector<1x512xi32>
    %c512_i32 = arith.constant 512 : i32
    %9 = vector.broadcast %c512_i32 : i32 to vector<1x512xi32>
    %10 = arith.cmpi slt, %8, %9 : vector<1x512xi32>
    %c256_i32 = arith.constant 256 : i32
    %c0_i32 = arith.constant 0 : i32
    %11 = arith.cmpi eq, %c256_i32, %c0_i32 : i32
    %c1_i32 = arith.constant 1 : i32
    %12 = arith.select %11, %c1_i32, %c256_i32 : i32
    %13 = vector.broadcast %12 : i32 to vector<1x512xi32>
    %14 = arith.remsi %8, %13 : vector<1x512xi32>
    %c0_i32_6 = arith.constant 0 : i32
    %15 = vector.broadcast %c0_i32_6 : i32 to vector<1x512xi32>
    %16 = arith.cmpi ne, %14, %15 : vector<1x512xi32>
    %c0_i32_7 = arith.constant 0 : i32
    %17 = vector.broadcast %c0_i32_7 : i32 to vector<1x512xi32>
    %18 = arith.cmpi slt, %14, %17 : vector<1x512xi32>
    %c0_i32_8 = arith.constant 0 : i32
    %19 = arith.cmpi slt, %12, %c0_i32_8 : i32
    %20 = vector.broadcast %19 : i1 to vector<1x512xi1>
    %21 = vector.broadcast %20 : vector<1x512xi1> to vector<1x512xi1>
    %22 = arith.xori %18, %21 : vector<1x512xi1>
    %23 = arith.andi %22, %16 : vector<1x512xi1>
    %24 = vector.broadcast %12 : i32 to vector<1x512xi32>
    %25 = arith.addi %14, %24 : vector<1x512xi32>
    %26 = arith.select %23, %25, %14 : vector<1x512xi1>, vector<1x512xi32>
    %c16_i32 = arith.constant 16 : i32
    %c0_i32_9 = arith.constant 0 : i32
    %27 = arith.cmpi eq, %c16_i32, %c0_i32_9 : i32
    %c1_i32_10 = arith.constant 1 : i32
    %28 = arith.select %27, %c1_i32_10, %c16_i32 : i32
    %29 = vector.broadcast %28 : i32 to vector<1x512xi32>
    %30 = arith.remsi %26, %29 : vector<1x512xi32>
    %c0_i32_11 = arith.constant 0 : i32
    %31 = vector.broadcast %c0_i32_11 : i32 to vector<1x512xi32>
    %32 = arith.cmpi ne, %30, %31 : vector<1x512xi32>
    %c0_i32_12 = arith.constant 0 : i32
    %33 = vector.broadcast %c0_i32_12 : i32 to vector<1x512xi32>
    %34 = arith.cmpi slt, %30, %33 : vector<1x512xi32>
    %c0_i32_13 = arith.constant 0 : i32
    %35 = arith.cmpi slt, %28, %c0_i32_13 : i32
    %36 = vector.broadcast %35 : i1 to vector<1x512xi1>
    %37 = vector.broadcast %36 : vector<1x512xi1> to vector<1x512xi1>
    %38 = arith.xori %34, %37 : vector<1x512xi1>
    %39 = arith.andi %38, %32 : vector<1x512xi1>
    %40 = vector.broadcast %28 : i32 to vector<1x512xi32>
    %41 = arith.addi %30, %40 : vector<1x512xi32>
    %42 = arith.select %39, %41, %30 : vector<1x512xi1>, vector<1x512xi32>
    %c15_i32 = arith.constant 15 : i32
    %43 = vector.broadcast %c15_i32 : i32 to vector<1x512xi32>
    %44 = arith.cmpi slt, %42, %43 : vector<1x512xi32>
    %45 = arith.andi %10, %44 : vector<1x512xi1>
    %c14_i32 = arith.constant 14 : i32
    %46 = vector.broadcast %c14_i32 : i32 to vector<1x512xi32>
    %47 = arith.cmpi slt, %42, %46 : vector<1x512xi32>
    %48 = arith.andi %10, %47 : vector<1x512xi1>
    %c1_i32_14 = arith.constant 1 : i32
    %49 = vector.broadcast %c1_i32_14 : i32 to vector<1x512xi32>
    %50 = arith.cmpi sge, %42, %49 : vector<1x512xi32>
    %51 = arith.andi %10, %50 : vector<1x512xi1>
    %c2_i32 = arith.constant 2 : i32
    %52 = vector.broadcast %c2_i32 : i32 to vector<1x512xi32>
    %53 = arith.cmpi sge, %42, %52 : vector<1x512xi32>
    %54 = arith.andi %10, %53 : vector<1x512xi1>
    %c240_i32 = arith.constant 240 : i32
    %55 = vector.broadcast %c240_i32 : i32 to vector<1x512xi32>
    %56 = arith.cmpi slt, %26, %55 : vector<1x512xi32>
    %57 = arith.andi %10, %56 : vector<1x512xi1>
    %c224_i32 = arith.constant 224 : i32
    %58 = vector.broadcast %c224_i32 : i32 to vector<1x512xi32>
    %59 = arith.cmpi slt, %26, %58 : vector<1x512xi32>
    %60 = arith.andi %10, %59 : vector<1x512xi1>
    %c16_i32_15 = arith.constant 16 : i32
    %61 = vector.broadcast %c16_i32_15 : i32 to vector<1x512xi32>
    %62 = arith.cmpi sge, %26, %61 : vector<1x512xi32>
    %63 = arith.andi %10, %62 : vector<1x512xi1>
    %c32_i32 = arith.constant 32 : i32
    %64 = vector.broadcast %c32_i32 : i32 to vector<1x512xi32>
    %65 = arith.cmpi sge, %26, %64 : vector<1x512xi32>
    %66 = arith.andi %10, %65 : vector<1x512xi1>
    %c511_i32 = arith.constant 511 : i32
    %67 = tpu.dynamic_rotate %7 by %c511_i32 dim 1 : vector<8x512xf32>, i32 -> vector<8x512xf32>
    %cst_16 = arith.constant 0.000000e+00 : f32
    %68 = vector.shape_cast %45 : vector<1x512xi1> to vector<1x512xi1>
    %69 = vector.broadcast %68 : vector<1x512xi1> to vector<8x512xi1>
    %70 = vector.broadcast %cst_16 : f32 to vector<8x512xf32>
    %71 = arith.select %69, %67, %70 : vector<8x512xi1>, vector<8x512xf32>
    %c1_i32_17 = arith.constant 1 : i32
    %72 = tpu.dynamic_rotate %7 by %c1_i32_17 dim 1 : vector<8x512xf32>, i32 -> vector<8x512xf32>
    %cst_18 = arith.constant 0.000000e+00 : f32
    %73 = vector.shape_cast %51 : vector<1x512xi1> to vector<1x512xi1>
    %74 = vector.broadcast %73 : vector<1x512xi1> to vector<8x512xi1>
    %75 = vector.broadcast %cst_18 : f32 to vector<8x512xf32>
    %76 = arith.select %74, %72, %75 : vector<8x512xi1>, vector<8x512xf32>
    %77 = arith.maximumf %71, %76 : vector<8x512xf32>
    %78 = arith.maximumf %7, %77 : vector<8x512xf32>
    %c510_i32 = arith.constant 510 : i32
    %79 = tpu.dynamic_rotate %7 by %c510_i32 dim 1 : vector<8x512xf32>, i32 -> vector<8x512xf32>
    %cst_19 = arith.constant 0.000000e+00 : f32
    %80 = vector.shape_cast %48 : vector<1x512xi1> to vector<1x512xi1>
    %81 = vector.broadcast %80 : vector<1x512xi1> to vector<8x512xi1>
    %82 = vector.broadcast %cst_19 : f32 to vector<8x512xf32>
    %83 = arith.select %81, %79, %82 : vector<8x512xi1>, vector<8x512xf32>
    %c2_i32_20 = arith.constant 2 : i32
    %84 = tpu.dynamic_rotate %7 by %c2_i32_20 dim 1 : vector<8x512xf32>, i32 -> vector<8x512xf32>
    %cst_21 = arith.constant 0.000000e+00 : f32
    %85 = vector.shape_cast %54 : vector<1x512xi1> to vector<1x512xi1>
    %86 = vector.broadcast %85 : vector<1x512xi1> to vector<8x512xi1>
    %87 = vector.broadcast %cst_21 : f32 to vector<8x512xf32>
    %88 = arith.select %86, %84, %87 : vector<8x512xi1>, vector<8x512xf32>
    %89 = arith.maximumf %83, %88 : vector<8x512xf32>
    %90 = arith.maximumf %78, %89 : vector<8x512xf32>
    %c496_i32 = arith.constant 496 : i32
    %91 = tpu.dynamic_rotate %90 by %c496_i32 dim 1 : vector<8x512xf32>, i32 -> vector<8x512xf32>
    %cst_22 = arith.constant 0.000000e+00 : f32
    %92 = vector.shape_cast %57 : vector<1x512xi1> to vector<1x512xi1>
    %93 = vector.broadcast %92 : vector<1x512xi1> to vector<8x512xi1>
    %94 = vector.broadcast %cst_22 : f32 to vector<8x512xf32>
    %95 = arith.select %93, %91, %94 : vector<8x512xi1>, vector<8x512xf32>
    %c16_i32_23 = arith.constant 16 : i32
    %96 = tpu.dynamic_rotate %90 by %c16_i32_23 dim 1 : vector<8x512xf32>, i32 -> vector<8x512xf32>
    %cst_24 = arith.constant 0.000000e+00 : f32
    %97 = vector.shape_cast %63 : vector<1x512xi1> to vector<1x512xi1>
    %98 = vector.broadcast %97 : vector<1x512xi1> to vector<8x512xi1>
    %99 = vector.broadcast %cst_24 : f32 to vector<8x512xf32>
    %100 = arith.select %98, %96, %99 : vector<8x512xi1>, vector<8x512xf32>
    %101 = arith.maximumf %95, %100 : vector<8x512xf32>
    %102 = arith.maximumf %90, %101 : vector<8x512xf32>
    %c480_i32 = arith.constant 480 : i32
    %103 = tpu.dynamic_rotate %90 by %c480_i32 dim 1 : vector<8x512xf32>, i32 -> vector<8x512xf32>
    %cst_25 = arith.constant 0.000000e+00 : f32
    %104 = vector.shape_cast %60 : vector<1x512xi1> to vector<1x512xi1>
    %105 = vector.broadcast %104 : vector<1x512xi1> to vector<8x512xi1>
    %106 = vector.broadcast %cst_25 : f32 to vector<8x512xf32>
    %107 = arith.select %105, %103, %106 : vector<8x512xi1>, vector<8x512xf32>
    %c32_i32_26 = arith.constant 32 : i32
    %108 = tpu.dynamic_rotate %90 by %c32_i32_26 dim 1 : vector<8x512xf32>, i32 -> vector<8x512xf32>
    %cst_27 = arith.constant 0.000000e+00 : f32
    %109 = vector.shape_cast %66 : vector<1x512xi1> to vector<1x512xi1>
    %110 = vector.broadcast %109 : vector<1x512xi1> to vector<8x512xi1>
    %111 = vector.broadcast %cst_27 : f32 to vector<8x512xf32>
    %112 = arith.select %110, %108, %111 : vector<8x512xi1>, vector<8x512xf32>
    %113 = arith.maximumf %107, %112 : vector<8x512xf32>
    %114 = arith.maximumf %102, %113 : vector<8x512xf32>
    %c511_i32_28 = arith.constant 511 : i32
    %115 = tpu.dynamic_rotate %114 by %c511_i32_28 dim 1 : vector<8x512xf32>, i32 -> vector<8x512xf32>
    %cst_29 = arith.constant 0.000000e+00 : f32
    %116 = vector.shape_cast %45 : vector<1x512xi1> to vector<1x512xi1>
    %117 = vector.broadcast %116 : vector<1x512xi1> to vector<8x512xi1>
    %118 = vector.broadcast %cst_29 : f32 to vector<8x512xf32>
    %119 = arith.select %117, %115, %118 : vector<8x512xi1>, vector<8x512xf32>
    %c1_i32_30 = arith.constant 1 : i32
    %120 = tpu.dynamic_rotate %114 by %c1_i32_30 dim 1 : vector<8x512xf32>, i32 -> vector<8x512xf32>
    %cst_31 = arith.constant 0.000000e+00 : f32
    %121 = vector.shape_cast %51 : vector<1x512xi1> to vector<1x512xi1>
    %122 = vector.broadcast %121 : vector<1x512xi1> to vector<8x512xi1>
    %123 = vector.broadcast %cst_31 : f32 to vector<8x512xf32>
    %124 = arith.select %122, %120, %123 : vector<8x512xi1>, vector<8x512xf32>
    %125 = arith.maximumf %119, %124 : vector<8x512xf32>
    %126 = arith.maximumf %114, %125 : vector<8x512xf32>
    %c510_i32_32 = arith.constant 510 : i32
    %127 = tpu.dynamic_rotate %114 by %c510_i32_32 dim 1 : vector<8x512xf32>, i32 -> vector<8x512xf32>
    %cst_33 = arith.constant 0.000000e+00 : f32
    %128 = vector.shape_cast %48 : vector<1x512xi1> to vector<1x512xi1>
    %129 = vector.broadcast %128 : vector<1x512xi1> to vector<8x512xi1>
    %130 = vector.broadcast %cst_33 : f32 to vector<8x512xf32>
    %131 = arith.select %129, %127, %130 : vector<8x512xi1>, vector<8x512xf32>
    %c2_i32_34 = arith.constant 2 : i32
    %132 = tpu.dynamic_rotate %114 by %c2_i32_34 dim 1 : vector<8x512xf32>, i32 -> vector<8x512xf32>
    %cst_35 = arith.constant 0.000000e+00 : f32
    %133 = vector.shape_cast %54 : vector<1x512xi1> to vector<1x512xi1>
    %134 = vector.broadcast %133 : vector<1x512xi1> to vector<8x512xi1>
    %135 = vector.broadcast %cst_35 : f32 to vector<8x512xf32>
    %136 = arith.select %134, %132, %135 : vector<8x512xi1>, vector<8x512xf32>
    %137 = arith.maximumf %131, %136 : vector<8x512xf32>
    %138 = arith.maximumf %126, %137 : vector<8x512xf32>
    %c496_i32_36 = arith.constant 496 : i32
    %139 = tpu.dynamic_rotate %138 by %c496_i32_36 dim 1 : vector<8x512xf32>, i32 -> vector<8x512xf32>
    %cst_37 = arith.constant 0.000000e+00 : f32
    %140 = vector.shape_cast %57 : vector<1x512xi1> to vector<1x512xi1>
    %141 = vector.broadcast %140 : vector<1x512xi1> to vector<8x512xi1>
    %142 = vector.broadcast %cst_37 : f32 to vector<8x512xf32>
    %143 = arith.select %141, %139, %142 : vector<8x512xi1>, vector<8x512xf32>
    %c16_i32_38 = arith.constant 16 : i32
    %144 = tpu.dynamic_rotate %138 by %c16_i32_38 dim 1 : vector<8x512xf32>, i32 -> vector<8x512xf32>
    %cst_39 = arith.constant 0.000000e+00 : f32
    %145 = vector.shape_cast %63 : vector<1x512xi1> to vector<1x512xi1>
    %146 = vector.broadcast %145 : vector<1x512xi1> to vector<8x512xi1>
    %147 = vector.broadcast %cst_39 : f32 to vector<8x512xf32>
    %148 = arith.select %146, %144, %147 : vector<8x512xi1>, vector<8x512xf32>
    %149 = arith.maximumf %143, %148 : vector<8x512xf32>
    %150 = arith.maximumf %138, %149 : vector<8x512xf32>
    %c480_i32_40 = arith.constant 480 : i32
    %151 = tpu.dynamic_rotate %138 by %c480_i32_40 dim 1 : vector<8x512xf32>, i32 -> vector<8x512xf32>
    %cst_41 = arith.constant 0.000000e+00 : f32
    %152 = vector.shape_cast %60 : vector<1x512xi1> to vector<1x512xi1>
    %153 = vector.broadcast %152 : vector<1x512xi1> to vector<8x512xi1>
    %154 = vector.broadcast %cst_41 : f32 to vector<8x512xf32>
    %155 = arith.select %153, %151, %154 : vector<8x512xi1>, vector<8x512xf32>
    %c32_i32_42 = arith.constant 32 : i32
    %156 = tpu.dynamic_rotate %138 by %c32_i32_42 dim 1 : vector<8x512xf32>, i32 -> vector<8x512xf32>
    %cst_43 = arith.constant 0.000000e+00 : f32
    %157 = vector.shape_cast %66 : vector<1x512xi1> to vector<1x512xi1>
    %158 = vector.broadcast %157 : vector<1x512xi1> to vector<8x512xi1>
    %159 = vector.broadcast %cst_43 : f32 to vector<8x512xf32>
    %160 = arith.select %158, %156, %159 : vector<8x512xi1>, vector<8x512xf32>
    %161 = arith.maximumf %155, %160 : vector<8x512xf32>
    %162 = arith.maximumf %150, %161 : vector<8x512xf32>
    %c511_i32_44 = arith.constant 511 : i32
    %163 = tpu.dynamic_rotate %162 by %c511_i32_44 dim 1 : vector<8x512xf32>, i32 -> vector<8x512xf32>
    %cst_45 = arith.constant 0.000000e+00 : f32
    %164 = vector.shape_cast %45 : vector<1x512xi1> to vector<1x512xi1>
    %165 = vector.broadcast %164 : vector<1x512xi1> to vector<8x512xi1>
    %166 = vector.broadcast %cst_45 : f32 to vector<8x512xf32>
    %167 = arith.select %165, %163, %166 : vector<8x512xi1>, vector<8x512xf32>
    %c1_i32_46 = arith.constant 1 : i32
    %168 = tpu.dynamic_rotate %162 by %c1_i32_46 dim 1 : vector<8x512xf32>, i32 -> vector<8x512xf32>
    %cst_47 = arith.constant 0.000000e+00 : f32
    %169 = vector.shape_cast %51 : vector<1x512xi1> to vector<1x512xi1>
    %170 = vector.broadcast %169 : vector<1x512xi1> to vector<8x512xi1>
    %171 = vector.broadcast %cst_47 : f32 to vector<8x512xf32>
    %172 = arith.select %170, %168, %171 : vector<8x512xi1>, vector<8x512xf32>
    %173 = arith.maximumf %167, %172 : vector<8x512xf32>
    %174 = arith.maximumf %162, %173 : vector<8x512xf32>
    %c510_i32_48 = arith.constant 510 : i32
    %175 = tpu.dynamic_rotate %162 by %c510_i32_48 dim 1 : vector<8x512xf32>, i32 -> vector<8x512xf32>
    %cst_49 = arith.constant 0.000000e+00 : f32
    %176 = vector.shape_cast %48 : vector<1x512xi1> to vector<1x512xi1>
    %177 = vector.broadcast %176 : vector<1x512xi1> to vector<8x512xi1>
    %178 = vector.broadcast %cst_49 : f32 to vector<8x512xf32>
    %179 = arith.select %177, %175, %178 : vector<8x512xi1>, vector<8x512xf32>
    %c2_i32_50 = arith.constant 2 : i32
    %180 = tpu.dynamic_rotate %162 by %c2_i32_50 dim 1 : vector<8x512xf32>, i32 -> vector<8x512xf32>
    %cst_51 = arith.constant 0.000000e+00 : f32
    %181 = vector.shape_cast %54 : vector<1x512xi1> to vector<1x512xi1>
    %182 = vector.broadcast %181 : vector<1x512xi1> to vector<8x512xi1>
    %183 = vector.broadcast %cst_51 : f32 to vector<8x512xf32>
    %184 = arith.select %182, %180, %183 : vector<8x512xi1>, vector<8x512xf32>
    %185 = arith.maximumf %179, %184 : vector<8x512xf32>
    %186 = arith.maximumf %174, %185 : vector<8x512xf32>
    %c496_i32_52 = arith.constant 496 : i32
    %187 = tpu.dynamic_rotate %186 by %c496_i32_52 dim 1 : vector<8x512xf32>, i32 -> vector<8x512xf32>
    %cst_53 = arith.constant 0.000000e+00 : f32
    %188 = vector.shape_cast %57 : vector<1x512xi1> to vector<1x512xi1>
    %189 = vector.broadcast %188 : vector<1x512xi1> to vector<8x512xi1>
    %190 = vector.broadcast %cst_53 : f32 to vector<8x512xf32>
    %191 = arith.select %189, %187, %190 : vector<8x512xi1>, vector<8x512xf32>
    %c16_i32_54 = arith.constant 16 : i32
    %192 = tpu.dynamic_rotate %186 by %c16_i32_54 dim 1 : vector<8x512xf32>, i32 -> vector<8x512xf32>
    %cst_55 = arith.constant 0.000000e+00 : f32
    %193 = vector.shape_cast %63 : vector<1x512xi1> to vector<1x512xi1>
    %194 = vector.broadcast %193 : vector<1x512xi1> to vector<8x512xi1>
    %195 = vector.broadcast %cst_55 : f32 to vector<8x512xf32>
    %196 = arith.select %194, %192, %195 : vector<8x512xi1>, vector<8x512xf32>
    %197 = arith.maximumf %191, %196 : vector<8x512xf32>
    %198 = arith.maximumf %186, %197 : vector<8x512xf32>
    %c480_i32_56 = arith.constant 480 : i32
    %199 = tpu.dynamic_rotate %186 by %c480_i32_56 dim 1 : vector<8x512xf32>, i32 -> vector<8x512xf32>
    %cst_57 = arith.constant 0.000000e+00 : f32
    %200 = vector.shape_cast %60 : vector<1x512xi1> to vector<1x512xi1>
    %201 = vector.broadcast %200 : vector<1x512xi1> to vector<8x512xi1>
    %202 = vector.broadcast %cst_57 : f32 to vector<8x512xf32>
    %203 = arith.select %201, %199, %202 : vector<8x512xi1>, vector<8x512xf32>
    %c32_i32_58 = arith.constant 32 : i32
    %204 = tpu.dynamic_rotate %186 by %c32_i32_58 dim 1 : vector<8x512xf32>, i32 -> vector<8x512xf32>
    %cst_59 = arith.constant 0.000000e+00 : f32
    %205 = vector.shape_cast %66 : vector<1x512xi1> to vector<1x512xi1>
    %206 = vector.broadcast %205 : vector<1x512xi1> to vector<8x512xi1>
    %207 = vector.broadcast %cst_59 : f32 to vector<8x512xf32>
    %208 = arith.select %206, %204, %207 : vector<8x512xi1>, vector<8x512xf32>
    %209 = arith.maximumf %203, %208 : vector<8x512xf32>
    %210 = arith.maximumf %198, %209 : vector<8x512xf32>
    %c0_60 = arith.constant 0 : index
    %c0_61 = arith.constant 0 : index
    %c0_62 = arith.constant 0 : index
    %211 = vector.load %arg4[%c0_60, %c0_61, %c0_62] : memref<4x8x8xf32, #tpu.memory_space<vmem>>, vector<1x8x8xf32>
    %212 = vector.shape_cast %211 : vector<1x8x8xf32> to vector<8x8xf32>
    %cst_63 = arith.constant dense<0.000000e+00> : vector<8x512xf32>
    %213 = tpu.matmul %212, %7, %cst_63 {dimension_numbers = #tpu.dot_dimension_numbers<[1], [0], [0], [1], [0, 0, 1, 1], [], []>} : vector<8x8xf32>, vector<8x512xf32>, vector<8x512xf32> -> vector<8x512xf32>
    %c1 = arith.constant 1 : index
    %c0_64 = arith.constant 0 : index
    %c0_65 = arith.constant 0 : index
    %214 = vector.load %arg4[%c1, %c0_64, %c0_65] : memref<4x8x8xf32, #tpu.memory_space<vmem>>, vector<1x8x8xf32>
    %215 = vector.shape_cast %214 : vector<1x8x8xf32> to vector<8x8xf32>
    %cst_66 = arith.constant dense<0.000000e+00> : vector<8x512xf32>
    %216 = tpu.matmul %215, %114, %cst_66 {dimension_numbers = #tpu.dot_dimension_numbers<[1], [0], [0], [1], [0, 0, 1, 1], [], []>} : vector<8x8xf32>, vector<8x512xf32>, vector<8x512xf32> -> vector<8x512xf32>
    %217 = arith.addf %213, %216 : vector<8x512xf32>
    %c2 = arith.constant 2 : index
    %c0_67 = arith.constant 0 : index
    %c0_68 = arith.constant 0 : index
    %218 = vector.load %arg4[%c2, %c0_67, %c0_68] : memref<4x8x8xf32, #tpu.memory_space<vmem>>, vector<1x8x8xf32>
    %219 = vector.shape_cast %218 : vector<1x8x8xf32> to vector<8x8xf32>
    %cst_69 = arith.constant dense<0.000000e+00> : vector<8x512xf32>
    %220 = tpu.matmul %219, %162, %cst_69 {dimension_numbers = #tpu.dot_dimension_numbers<[1], [0], [0], [1], [0, 0, 1, 1], [], []>} : vector<8x8xf32>, vector<8x512xf32>, vector<8x512xf32> -> vector<8x512xf32>
    %221 = arith.addf %217, %220 : vector<8x512xf32>
    %c3 = arith.constant 3 : index
    %c0_70 = arith.constant 0 : index
    %c0_71 = arith.constant 0 : index
    %222 = vector.load %arg4[%c3, %c0_70, %c0_71] : memref<4x8x8xf32, #tpu.memory_space<vmem>>, vector<1x8x8xf32>
    %223 = vector.shape_cast %222 : vector<1x8x8xf32> to vector<8x8xf32>
    %cst_72 = arith.constant dense<0.000000e+00> : vector<8x512xf32>
    %224 = tpu.matmul %223, %210, %cst_72 {dimension_numbers = #tpu.dot_dimension_numbers<[1], [0], [0], [1], [0, 0, 1, 1], [], []>} : vector<8x8xf32>, vector<8x512xf32>, vector<8x512xf32> -> vector<8x512xf32>
    %225 = arith.addf %221, %224 : vector<8x512xf32>
    %c0_73 = arith.constant 0 : index
    %c0_74 = arith.constant 0 : index
    %226 = vector.load %arg5[%c0_73, %c0_74] : memref<8x1xf32, #tpu.memory_space<vmem>>, vector<8x1xf32>
    %227 = vector.broadcast %226 : vector<8x1xf32> to vector<8x512xf32>
    %228 = arith.addf %225, %227 : vector<8x512xf32>
    %cst_75 = arith.constant 0.000000e+00 : f32
    %229 = vector.broadcast %cst_75 : f32 to vector<8x512xf32>
    %230 = arith.maximumf %228, %229 : vector<8x512xf32>
    %c0_76 = arith.constant 0 : index
    %c0_77 = arith.constant 0 : index
    %231 = vector.load %arg6[%c0_76, %c0_77] : memref<8x512xf32, #tpu.memory_space<vmem>>, vector<8x512xf32>
    tpu.vector_store %arg6[%c0_76, %c0_77], %230 {strides = array<i32>} : memref<8x512xf32, #tpu.memory_space<vmem>>, vector<8x512xf32>,
    return
  }
  func.func @transform_0(%arg0: i32) -> (i32, i32) {
    %c0_i32 = arith.constant 0 : i32
    %c0_i32_0 = arith.constant 0 : i32
    %c0_i32_1 = arith.constant 0 : i32
    return %c0_i32, %c0_i32_0 : i32, i32
  }
  func.func @transform_1(%arg0: i32) -> (i32, i32) {
    %c0_i32 = arith.constant 0 : i32
    %c0_i32_0 = arith.constant 0 : i32
    %c0_i32_1 = arith.constant 0 : i32
    return %c0_i32, %c0_i32_0 : i32, i32
  }
  func.func @transform_2(%arg0: i32) -> (i32, i32) {
    %c0_i32 = arith.constant 0 : i32
    %c0_i32_0 = arith.constant 0 : i32
    %c0_i32_1 = arith.constant 0 : i32
    return %c0_i32, %c0_i32_0 : i32, i32
  }
  func.func @transform_3(%arg0: i32) -> (i32, i32, i32) {
    %c0_i32 = arith.constant 0 : i32
    %c0_i32_0 = arith.constant 0 : i32
    %c0_i32_1 = arith.constant 0 : i32
    %c0_i32_2 = arith.constant 0 : i32
    return %c0_i32, %c0_i32_0, %c0_i32_1 : i32, i32, i32
  }
  func.func @transform_4(%arg0: i32) -> (i32, i32) {
    %c0_i32 = arith.constant 0 : i32
    %c0_i32_0 = arith.constant 0 : i32
    %c0_i32_1 = arith.constant 0 : i32
    return %c0_i32, %c0_i32_0 : i32, i32
  }
  func.func @transform_5(%arg0: i32) -> (i32, i32) {
    %c0_i32 = arith.constant 0 : i32
    %c0_i32_0 = arith.constant 0 : i32
    %c0_i32_1 = arith.constant 0 : i32
    return %c0_i32, %c0_i32_0 : i32, i32
  }
}

</mosaic_0001>

<bundles_post_ra>
// kernel: tpu_custom_call.1
= control target key start
LH: loop header
LB: loop body
LE: loop exit
PB: predicated region body
PF: predicated region fallthrough
CT: control target
= control target key end

     0   :  { %10 = vsyncpa [#allocation3], 0  ;;  %s2449_s0 = inlined_call_operand.hbm [shape: f32[8,512], index: 0, kind: input, shape index: {}]   ;;  %s2450_s1 = inlined_call_operand.vmem [shape: f32[8,8], index: 1, kind: input, shape index: {}]   ;;  %s2451_s2 = inlined_call_operand.vmem [shape: f32[8,1], index: 2, kind: input, shape index: {}]   ;;  %s2452_s3 = inlined_call_operand.hbm [shape: f32[4,8,8], index: 3, kind: input, shape index: {}]   ;;  %s2453_s4 = inlined_call_operand.vmem [shape: f32[8,1], index: 4, kind: input, shape index: {}]   ;;  %s2454_s5 = inlined_call_operand.hbm [shape: f32[8,512], index: 5, kind: output, shape index: {}]  }
   0x1   :  { %11 = vsyncpa [#allocation6], 0 }
   0x2   :  { %12 = vsyncpa [#allocation4], 0  ;;  %s1669_s18 = smov [#allocation2]   ;;  %s1670_s20 = smov [#allocation5]  }
   0x3   :  { %s19_s19 = sshll.u32 %s1669_s18, 4  ;;  %s32_s21 = sshll.u32 %s1670_s20, 4  ;;  %s20_s19 = int_to_ptr.vmem [resolvable:$true] %s19_s19  ;;  %s1714_s21 = int_to_ptr.vmem [resolvable:$true] %s32_s21 }
   0x4   :  { %s1597_s24 = scalar_lea.hbm %s2449_s0, 512 }
   0x5   :  { %p1598_p0 = scmp.ne.s32.totalorder %s2449_s0, %s1597_s24  ;;  %p1601_p1 = scmp.lt.u32.totalorder %s1597_s24, %s2449_s0 }
   0x7   :  { %p1603_p2 = pnand %p1601_p1, %p1598_p0 }
   0x9   :  { %1606 = shalt.err (!%p1603_p2)
}
   0xa   :  { %s1607_s29 = scalar_lea.vmem %s20_s19, 512  ;;  %p1612_p4 = scmp.lt.s32.totalorder %s20_s19, %s20_s19 }
   0xb   :  { %p1608_p3 = scmp.ne.s32.totalorder %s20_s19, %s1607_s29  ;;  %p1613_p5 = scmp.lt.s32.totalorder %s1607_s29, %s1607_s29 }
   0xd   :  { %p1614_p6 = por %p1613_p5, %p1612_p4 }
   0xf   :  { %p1615_p7 = pnand %p1614_p6, %p1608_p3 }
  0x11   :  { %1618 = shalt.err (!%p1615_p7)
}
  0x12   :  { %22 = dma.hbm_to_vmem [thread:$0]  %s2449_s0, 512, %s20_s19, [#allocation3]  }
  0x13   :  { %s1619_s9 = scalar_lea.hbm %s2452_s3, 512 }
  0x14   :  { %p1620_p8 = scmp.ne.s32.totalorder %s2452_s3, %s1619_s9  ;;  %p1623_p9 = scmp.lt.u32.totalorder %s1619_s9, %s2452_s3 }
  0x16   :  { %p1625_p10 = pnand %p1623_p9, %p1620_p8 }
  0x18   :  { %1628 = shalt.err (!%p1625_p10)
}
  0x19   :  { %s1629_s14 = scalar_lea.vmem %s1714_s21, 512  ;;  %p1634_p12 = scmp.lt.s32.totalorder %s1714_s21, %s1714_s21 }
  0x1a   :  { %p1630_p11 = scmp.ne.s32.totalorder %s1714_s21, %s1629_s14  ;;  %p1635_p13 = scmp.lt.s32.totalorder %s1629_s14, %s1629_s14 }
  0x1c   :  { %p1636_p0 = por %p1635_p13, %p1634_p12 }
  0x1e   :  { %p1637_p1 = pnand %p1636_p0, %p1630_p11 }
  0x20   :  { %1640 = shalt.err (!%p1637_p1)
}
  0x21   :  { %s1671_s0 = smov 128   ;;  %s1672_s15 = smov 8  }
  0x22   :  { %38 = dma.hbm_to_vmem [thread:$0]  %s2452_s3, 512, %s1714_s21, [#allocation6], %s1671_s0, %s1671_s0, %s1672_s15  }
  0x23   :  { %1663 = dma.done.wait [#allocation3], 512  }
  0x24   :  { %1664 = vsyncadd [#allocation3], 4294966784 }
  0x25   :  { %1665 = dma.done.wait [#allocation6], 512  }
  0x26   :  { %1666 = vsyncadd [#allocation6], 4294966784  ;;  %v1673_v0 = vmov 0.0   ;;  %v1674_v1 = vmov 0   ;;  %v48_v2 = vld [vmem:[#allocation2 + $0x8] sm:$0xff]  ;;  %v50_v3 = vld [vmem:[#allocation2 + $0x18] sm:$0xff]  ;;  %v208_v21 = vlaneseq }
  0x27   :  { %126 = vmatprep.mubr.f32.mxu0 %v1673_v0  ;;  %197 = vmatprep.mubr.f32.mxu1 %v1673_v0  ;;  %v47_v4 = vld [vmem:[#allocation2] sm:$0xff]  ;;  %vm2455_vm0 = vcmask 64512   ;;  %v49_v5 = vld [vmem:[#allocation2 + $0x10] sm:$0xff]  ;;  %s1677_s21 = smov 126   ;;  %s1678_s22 = smov 2  }
  0x28   :  { %1595 = vset.pattern.permute.xlu0 %v1674_v1  ;;  %1596 = vset.pattern.permute.xlu1 %v1674_v1  ;;  %v51_v6 = vld [vmem:[%s2450_s1] sm:$0xff]  ;;  %s1675_s1 = smov 127   ;;  %v1797_v24 = vand.u32 127, %v208_v21  ;;  %s1679_s23 = smov 112  }
  0x29   :  { %62 = vmatprep.subr.mxu0 %v48_v2  ;;  %133 = vmatprep.subr.mxu1 %v50_v3  ;;  %v52_v7 = vld [vmem:[%s2451_s2] sm:$0xff]  ;;  %s1676_s2 = smov 1   ;;  %s1680_s24 = smov 16  }
  0x2a   :  { %63 = vmatpush1.msra.mxu0 %v47_v4  ;;  %134 = vmatpush1.msra.mxu1 %v49_v5  ;;  %v211_v27 = vadd.s32 256, %v1797_v24  ;;  %v212_v28 = vadd.s32 384, %v1797_v24  ;;  %v210_v29 = vadd.s32 128, %v1797_v24  ;;  %v1809_v35 = vand.u32 255, %v1797_v24  ;;  %s1681_s25 = smov 96   ;;  %s1682_s26 = smov 32  }
  0x2b   :  { %1558 = vmatmul.mubr.msk.f32.vlgmr.msra.gmra.mrb[0].mxu0 %vm2455_vm0, %v51_v6  ;;  %1559 = vmatmul.mubr.msk.f32.vlgmr.msra.gmra.mrb[0].mxu1 %vm2455_vm0, %v51_v6  ;;  %vm385_vm1 = vcmp.lt.s32.totalorder %v1797_v24, 127  ;;  %vm410_vm5 = vcmp.lt.s32.totalorder %v1797_v24, 1  ;;  %vm2472_vm9 = vcmp.lt.s32.totalorder %v1797_v24, 126  ;;  %vm2464_vm7 = vcmp.lt.s32.totalorder %v1797_v24, 2 }
  0x2c   :  { %55 = vperm.xlu0 %1595, %v52_v7   ;;  %999 = vmatprep.mubr.f32.mxu0 %v1673_v0  ;;  %v1802_v32 = vand.u32 255, %v211_v27  ;;  %v1804_v33 = vand.u32 255, %v212_v28  ;;  %v1806_v34 = vand.u32 255, %v210_v29  ;;  %v1821_v41 = vand.u32 15, %v1809_v35 }
  0x2d   :  { %1070 = vmatprep.mubr.f32.mxu1 %v1673_v0 }
  0x2e   :  { %v1812_v38 = vand.u32 15, %v1802_v32  ;;  %v1815_v39 = vand.u32 15, %v1804_v33  ;;  %v1818_v40 = vand.u32 15, %v1806_v34  ;;  %vm2471_vm13 = vcmp.lt.s32.totalorder %v1821_v41, 15 }
  0x2f   :  { %vm2462_vm11 = vcmp.ge.s32.totalorder %v1821_v41, 2 }
  0x30   :  { %vm2458_vm2 = vcmp.lt.s32.totalorder %v1812_v38, 15  ;;  %vm2456_vm3 = vcmp.lt.s32.totalorder %v1815_v39, 15  ;;  %vm2473_vm4 = vcmp.ge.s32.totalorder %v1812_v38, 1  ;;  %vm2470_vm6 = vcmp.ge.s32.totalorder %v1818_v40, 1 }
  0x31   :  { %vm2457_vm8 = vcmp.ge.s32.totalorder %v1815_v39, 1  ;;  %vm314_vm14 = vcmp.lt.s32.totalorder %v1818_v40, 15  ;;  %vm2461_vm15 = vcmp.lt.s32.totalorder %v1812_v38, 14  ;;  %vm2463_vm0 = vcmp.ge.s32.totalorder %v1818_v40, 2 }
  0x32   :  { %vm2460_vm10 = vcmp.ge.s32.totalorder %v1812_v38, 2  ;;  %vm2459_vm12 = vcmp.ge.s32.totalorder %v1815_v39, 2 }
  0xab   :  { %v56_v8 = vpop.permute.xlu0 %55 }
  0xfe   :  { %v128_v9 = vpop.f32.mrb[0].mxu0  ;;  %v199_v10 = vpop.f32.mrb[0].mxu1 }
  0xff   :  { %v129_v11 = vadd.f32 %v128_v9, %v56_v8  ;;  %v200_v12 = vadd.f32 %v199_v10, %v56_v8  ;;  %v130_v13 = vpop.f32.mrb[1].mxu0  ;;  %v201_v14 = vpop.f32.mrb[1].mxu1 }
 0x100   :  { %v202_v17 = vadd.f32 %v201_v14, %v56_v8  ;;  %v131_v18 = vadd.f32 %v130_v13, %v56_v8 }
 0x101   :  { %v1757_v15 = vmax.f32 %v129_v11, 0.0  ;;  %v1759_v16 = vmax.f32 %v200_v12, 0.0 }
 0x102   :  { %v1765_v19 = vmax.f32 %v202_v17, 0.0  ;;  %v1771_v20 = vmax.f32 %v131_v18, 0.0 }
 0x103   :  { %381 = vrot.lane.b32.xlu1 %v1759_v16, %s1675_s1  ;;  %377 = vrot.lane.b32.xlu0 %v1757_v15, %s1675_s1 }
 0x107   :  { %402 = vrot.lane.b32.xlu1 %v1757_v15, %s1676_s2  ;;  %383 = vrot.lane.b32.xlu0 %v1765_v19, %s1675_s1 }
 0x10b   :  { %406 = vrot.lane.b32.xlu1 %v1759_v16, %s1676_s2  ;;  %404 = vrot.lane.b32.xlu0 %v1771_v20, %s1676_s2 }
 0x10f   :  { %435 = vrot.lane.b32.xlu1 %v1757_v15, %s1677_s21  ;;  %408 = vrot.lane.b32.xlu0 %v1765_v19, %s1676_s2 }
 0x113   :  { %439 = vrot.lane.b32.xlu1 %v1759_v16, %s1677_s21  ;;  %437 = vrot.lane.b32.xlu0 %v1771_v20, %s1677_s21 }
 0x117   :  { %460 = vrot.lane.b32.xlu1 %v1757_v15, %s1678_s22  ;;  %441 = vrot.lane.b32.xlu0 %v1765_v19, %s1677_s21 }
 0x11b   :  { %379 = vrot.lane.b32.xlu1 %v1771_v20, %s1675_s1  ;;  %462 = vrot.lane.b32.xlu0 %v1771_v20, %s1678_s22 }
 0x11f   :  { %464 = vrot.lane.b32.xlu1 %v1759_v16, %s1678_s22  ;;  %466 = vrot.lane.b32.xlu0 %v1765_v19, %s1678_s22 }
 0x175   :  { %v382_v22 = vpop.permute.xlu1 %381  ;;  %v378_v23 = vpop.permute.xlu0 %377 }
 0x179   :  { %v403_v25 = vpop.permute.xlu1 %402  ;;  %v384_v26 = vpop.permute.xlu0 %383 }
 0x17a   :  { %v386_v44 = vsel %vm385_vm1, %v382_v22, %v384_v26  ;;  %v389_v45 = vsel %vm385_vm1, %v384_v26, %v378_v23 }
 0x17b   :  { %v400_v49 = vsel %vm2458_vm2, %v386_v44, 0.0  ;;  %v401_v50 = vsel %vm2456_vm3, %v389_v45, 0.0  ;;  %vm2474_vm3 = vcmp.ge.s32.totalorder %v1821_v41, 1  ;;  %vm2476_vm2 = vcmp.lt.s32.totalorder %v1818_v40, 14 }
 0x17d   :  { %v407_v30 = vpop.permute.xlu1 %406  ;;  %v405_v31 = vpop.permute.xlu0 %404 }
 0x17e   :  { %v413_v51 = vsel %vm410_vm5, %v403_v25, %v405_v31  ;;  %v412_v52 = vsel %vm410_vm5, %v405_v31, %v407_v30 }
 0x17f   :  { %v424_v62 = vsel %vm2470_vm6, %v413_v51, 0.0  ;;  %v425_v3 = vsel %vm2473_vm4, %v412_v52, 0.0 }
 0x181   :  { %v436_v36 = vpop.permute.xlu1 %435  ;;  %v409_v37 = vpop.permute.xlu0 %408 }
 0x182   :  { %v411_v48 = vsel %vm410_vm5, %v407_v30, %v409_v37  ;;  %v414_v53 = vsel %vm410_vm5, %v409_v37, %v403_v25  ;;  %v429_v30 = vmax.f32 %v400_v49, %v425_v3 }
 0x183   :  { %v426_v54 = vsel %vm2457_vm8, %v411_v48, 0.0  ;;  %v423_v4 = vsel %vm2474_vm3, %v414_v53, 0.0  ;;  %vm2475_vm8 = vcmp.lt.s32.totalorder %v1821_v41, 14  ;;  %vm2477_vm3 = vcmp.lt.s32.totalorder %v1815_v39, 14 }
 0x184   :  { %v430_v7 = vmax.f32 %v401_v50, %v426_v54 }
 0x185   :  { %v440_v42 = vpop.permute.xlu1 %439  ;;  %v438_v43 = vpop.permute.xlu0 %437 }
 0x186   :  { %v445_v55 = vsel %vm2472_vm9, %v438_v43, %v440_v42  ;;  %v446_v58 = vsel %vm2472_vm9, %v436_v36, %v438_v43  ;;  %v434_v37 = vmax.f32 %v1765_v19, %v430_v7 }
 0x187   :  { %v456_v8 = vsel %vm2475_vm8, %v446_v58, 0.0  ;;  %v457_v9 = vsel %vm2476_vm2, %v445_v55, 0.0  ;;  %vm526_vm2 = vcmp.lt.s32.totalorder %v1797_v24, 16  ;;  %vm501_vm8 = vcmp.lt.s32.totalorder %v1797_v24, 112 }
 0x189   :  { %v461_v46 = vpop.permute.xlu1 %460  ;;  %v442_v47 = vpop.permute.xlu0 %441 }
 0x18a   :  { %v447_v5 = vsel %vm2472_vm9, %v442_v47, %v436_v36  ;;  %v444_v21 = vsel %vm2472_vm9, %v440_v42, %v442_v47 }
 0x18b   :  { %v458_v42 = vsel %vm2461_vm15, %v444_v21, 0.0  ;;  %vm363_vm15 = vcmp.ge.s32.totalorder %v1802_v32, 16 }
 0x18d   :  { %v380_v56 = vpop.permute.xlu1 %379  ;;  %v463_v57 = vpop.permute.xlu0 %462 }
 0x18e   :  { %v387_v59 = vsel %vm385_vm1, %v380_v56, %v382_v22  ;;  %v388_v60 = vsel %vm385_vm1, %v378_v23, %v380_v56  ;;  %v471_v61 = vsel %vm2464_vm7, %v461_v46, %v463_v57  ;;  %v459_v22 = vsel %vm2477_vm3, %v447_v5, 0.0 }
 0x18f   :  { %v398_v63 = vsel %vm2471_vm13, %v388_v60, 0.0  ;;  %v399_v1 = vsel %vm314_vm14, %v387_v59, 0.0  ;;  %v482_v2 = vsel %vm2463_vm0, %v471_v61, 0.0  ;;  %vm2465_vm3 = vcmp.lt.s32.totalorder %v1806_v34, 240 }
 0x190   :  { %v428_v6 = vmax.f32 %v399_v1, %v424_v62  ;;  %v427_v10 = vmax.f32 %v398_v63, %v423_v4  ;;  %v486_v14 = vmax.f32 %v457_v9, %v482_v2  ;;  %vm2467_vm0 = vcmp.lt.s32.totalorder %v1806_v34, 224 }
 0x191   :  { %v465_v11 = vpop.permute.xlu1 %464  ;;  %v467_v12 = vpop.permute.xlu0 %466 }
 0x192   :  { %v432_v13 = vmax.f32 %v1771_v20, %v428_v6  ;;  %v470_v17 = vsel %vm2464_vm7, %v463_v57, %v465_v11  ;;  %v469_v18 = vsel %vm2464_vm7, %v465_v11, %v467_v12  ;;  %v472_v23 = vsel %vm2464_vm7, %v467_v12, %v461_v46 }
 0x193   :  { %v484_v25 = vsel %vm2459_vm12, %v469_v18, 0.0  ;;  %v483_v27 = vsel %vm2460_vm10, %v470_v17, 0.0  ;;  %v481_v28 = vsel %vm2462_vm11, %v472_v23, 0.0  ;;  %v431_v31 = vmax.f32 %v1757_v15, %v427_v10 }
 0x194   :  { %v1902_v26 = vmax.f32 %v432_v13, %v486_v14  ;;  %v488_v29 = vmax.f32 %v459_v22, %v484_v25  ;;  %v485_v36 = vmax.f32 %v456_v8, %v481_v28  ;;  %v487_v43 = vmax.f32 %v458_v42, %v483_v27 }
 0x195   :  { %v433_v46 = vmax.f32 %v1759_v16, %v429_v30  ;;  %vm2466_vm12 = vcmp.ge.s32.totalorder %v1809_v35, 16  ;;  %vm348_vm10 = vcmp.lt.s32.totalorder %v1804_v33, 240  ;;  %vm559_vm11 = vcmp.lt.s32.totalorder %v1797_v24, 96 }
 0x196   :  { %495 = vrot.lane.b32.xlu0 %v1902_v26, %s1679_s23  ;;  %v1914_v44 = vmax.f32 %v431_v31, %v485_v36  ;;  %v1916_v45 = vmax.f32 %v434_v37, %v488_v29  ;;  %vm584_vm7 = vcmp.lt.s32.totalorder %v1797_v24, 32 }
 0x197   :  { %v1923_v47 = vmax.f32 %v433_v46, %v487_v43 }
 0x198   :  { %493 = vrot.lane.b32.xlu1 %v1914_v44, %s1679_s23 }
 0x19a   :  { %499 = vrot.lane.b32.xlu0 %v1916_v45, %s1679_s23 }
 0x19c   :  { %497 = vrot.lane.b32.xlu1 %v1923_v47, %s1679_s23 }
 0x19e   :  { %520 = vrot.lane.b32.xlu0 %v1902_v26, %s1680_s24 }
 0x1a0   :  { %518 = vrot.lane.b32.xlu1 %v1914_v44, %s1680_s24 }
 0x1a2   :  { %524 = vrot.lane.b32.xlu0 %v1916_v45, %s1680_s24 }
 0x1a4   :  { %522 = vrot.lane.b32.xlu1 %v1923_v47, %s1680_s24 }
 0x1a6   :  { %553 = vrot.lane.b32.xlu0 %v1902_v26, %s1681_s25 }
 0x1a8   :  { %551 = vrot.lane.b32.xlu1 %v1914_v44, %s1681_s25 }
 0x1aa   :  { %557 = vrot.lane.b32.xlu0 %v1916_v45, %s1681_s25 }
 0x1ac   :  { %555 = vrot.lane.b32.xlu1 %v1923_v47, %s1681_s25 }
 0x1ae   :  { %578 = vrot.lane.b32.xlu0 %v1902_v26, %s1682_s26 }
 0x1b0   :  { %576 = vrot.lane.b32.xlu1 %v1914_v44, %s1682_s26 }
 0x1b2   :  { %582 = vrot.lane.b32.xlu0 %v1916_v45, %s1682_s26 }
 0x1b4   :  { %580 = vrot.lane.b32.xlu1 %v1923_v47, %s1682_s26 }
 0x208   :  { %v496_v48 = vpop.permute.xlu0 %495 }
 0x20a   :  { %v494_v49 = vpop.permute.xlu1 %493 }
 0x20b   :  { %v504_v8 = vsel %vm501_vm8, %v494_v49, %v496_v48 }
 0x20c   :  { %v500_v50 = vpop.permute.xlu0 %499 }
 0x20d   :  { %v505_v63 = vsel %vm501_vm8, %v500_v50, %v494_v49 }
 0x20e   :  { %v498_v51 = vpop.permute.xlu1 %497  ;;  %v517_v9 = vsel %vm348_vm10, %v505_v63, 0.0 }
 0x20f   :  { %v503_v59 = vsel %vm501_vm8, %v496_v48, %v498_v51  ;;  %v502_v13 = vsel %vm501_vm8, %v498_v51, %v500_v50 }
 0x210   :  { %v521_v52 = vpop.permute.xlu0 %520  ;;  %v515_v1 = vsel %vm2465_vm3, %v503_v59, 0.0  ;;  %vm2469_vm3 = vcmp.lt.s32.totalorder %v1804_v33, 224 }
 0x212   :  { %v519_v53 = vpop.permute.xlu1 %518 }
 0x213   :  { %v529_v61 = vsel %vm526_vm2, %v519_v53, %v521_v52 }
 0x214   :  { %v525_v54 = vpop.permute.xlu0 %524  ;;  %v544_v5 = vmax.f32 %v515_v1, %v529_v61 }
 0x215   :  { %v530_v60 = vsel %vm526_vm2, %v525_v54, %v519_v53 }
 0x216   :  { %v523_v55 = vpop.permute.xlu1 %522  ;;  %v539_v2 = vsel %vm2466_vm12, %v530_v60, 0.0  ;;  %vm369_vm12 = vcmp.ge.s32.totalorder %v1809_v35, 32  ;;  %v548_v22 = vmax.f32 %v1902_v26, %v544_v5 }
 0x217   :  { %v528_v3 = vsel %vm526_vm2, %v521_v52, %v523_v55  ;;  %v527_v6 = vsel %vm526_vm2, %v523_v55, %v525_v54  ;;  %v543_v10 = vmax.f32 %v504_v8, %v539_v2 }
 0x218   :  { %v554_v56 = vpop.permute.xlu0 %553  ;;  %v541_v11 = vsel %vm363_vm15, %v528_v3, 0.0  ;;  %v546_v14 = vmax.f32 %v517_v9, %v527_v6 }
 0x219   :  { %v545_v28 = vmax.f32 %v502_v13, %v541_v11  ;;  %v547_v31 = vmax.f32 %v1914_v44, %v543_v10 }
 0x21a   :  { %v552_v57 = vpop.permute.xlu1 %551  ;;  %v550_v42 = vmax.f32 %v1916_v45, %v546_v14  ;;  %v931_v45 = vld [vmem:[#allocation5 + $0x8] sm:$0xff] }
 0x21b   :  { %v562_v29 = vsel %vm559_vm11, %v552_v57, %v554_v56  ;;  %v549_v52 = vmax.f32 %v1923_v47, %v545_v28 }
 0x21c   :  { %v558_v58 = vpop.permute.xlu0 %557 }
 0x21d   :  { %v563_v23 = vsel %vm559_vm11, %v558_v58, %v552_v57 }
 0x21e   :  { %v556_v62 = vpop.permute.xlu1 %555  ;;  %v575_v43 = vsel %vm2469_vm3, %v563_v23, 0.0 }
 0x21f   :  { %v561_v7 = vsel %vm559_vm11, %v554_v56, %v556_v62  ;;  %v560_v49 = vsel %vm559_vm11, %v556_v62, %v558_v58 }
 0x220   :  { %v579_v4 = vpop.permute.xlu0 %578  ;;  %v573_v17 = vsel %vm2467_vm0, %v561_v7, 0.0  ;;  %vm2468_vm0 = vcmp.ge.s32.totalorder %v1802_v32, 32 }
 0x222   :  { %v577_v12 = vpop.permute.xlu1 %576 }
 0x223   :  { %v587_v18 = vsel %vm584_vm7, %v577_v12, %v579_v4 }
 0x224   :  { %v583_v21 = vpop.permute.xlu0 %582  ;;  %v602_v25 = vmax.f32 %v573_v17, %v587_v18 }
 0x225   :  { %v588_v27 = vsel %vm584_vm7, %v583_v21, %v577_v12 }
 0x226   :  { %v597_v30 = vsel %vm369_vm12, %v588_v27, 0.0  ;;  %v2003_v36 = vmax.f32 %v548_v22, %v602_v25  ;;  %v581_v37 = vpop.permute.xlu1 %580 }
 0x227   :  { %v601_v26 = vmax.f32 %v562_v29, %v597_v30  ;;  %v585_v46 = vsel %vm584_vm7, %v581_v37, %v583_v21  ;;  %v586_v48 = vsel %vm584_vm7, %v579_v4, %v581_v37 }
 0x228   :  { %v599_v44 = vsel %vm2468_vm0, %v586_v48, 0.0  ;;  %v604_v51 = vmax.f32 %v575_v43, %v585_v46  ;;  %611 = vrot.lane.b32.xlu0 %v2003_v36, %s1675_s1  ;;  %935 = vmatprep.subr.mxu0 %v2003_v36  ;;  %vm2478_vm0 = vcmask 64512  }
 0x229   :  { %v2014_v50 = vmax.f32 %v547_v31, %v601_v26  ;;  %v603_v53 = vmax.f32 %v560_v49, %v599_v44  ;;  %vm2479_vm3 = vmmov %vm2478_vm0 }
 0x22a   :  { %v2022_v54 = vmax.f32 %v550_v42, %v604_v51 }
 0x22b   :  { %609 = vrot.lane.b32.xlu1 %v2014_v50, %s1675_s1  ;;  %936 = vmatpush1.msra.mxu0 %v2014_v50  ;;  %v2027_v55 = vmax.f32 %v549_v52, %v603_v53 }
 0x22c   :  { %1080 = vmatprep.subr.mxu0 %v1771_v20  ;;  %1560 = vmatmul.mubr.msk.f32.vlgmr.msra.gmra.mrb[2].mxu0 %vm2478_vm0, %v931_v45  ;;  %vm2480_vm0 = vcmp.ge.s32.totalorder %v1821_v41, 1 }
 0x22d   :  { %615 = vrot.lane.b32.xlu0 %v2022_v54, %s1675_s1  ;;  %1006 = vmatprep.subr.mxu1 %v2022_v54 }
 0x22e   :  { %1007 = vmatpush1.msra.mxu1 %v2027_v55  ;;  %1081 = vmatpush1.msra.mxu0 %v1757_v15 }
 0x22f   :  { %1151 = vmatprep.subr.mxu1 %v1765_v19  ;;  %613 = vrot.lane.b32.xlu1 %v2027_v55, %s1675_s1 }
 0x230   :  { %1561 = vmatmul.mubr.msk.f32.vlgmr.msra.gmra.mrb[2].mxu1 %vm2479_vm3, %v931_v45  ;;  %1144 = vmatprep.mubr.f32.mxu0 %v1673_v0  ;;  %vm2481_vm3 = vcmp.lt.s32.totalorder %v1812_v38, 15 }
 0x231   :  { %1152 = vmatpush1.msra.mxu1 %v1759_v16  ;;  %627 = vrot.lane.b32.xlu0 %v2003_v36, %s1676_s2 }
 0x232   :  { %1215 = vmatprep.mubr.f32.mxu1 %v1673_v0 }
 0x233   :  { %625 = vrot.lane.b32.xlu1 %v2014_v50, %s1676_s2 }
 0x235   :  { %631 = vrot.lane.b32.xlu0 %v2022_v54, %s1676_s2 }
 0x237   :  { %629 = vrot.lane.b32.xlu1 %v2027_v55, %s1676_s2 }
 0x239   :  { %651 = vrot.lane.b32.xlu0 %v2003_v36, %s1677_s21 }
 0x23b   :  { %649 = vrot.lane.b32.xlu1 %v2014_v50, %s1677_s21 }
 0x23d   :  { %655 = vrot.lane.b32.xlu0 %v2022_v54, %s1677_s21 }
 0x23f   :  { %653 = vrot.lane.b32.xlu1 %v2027_v55, %s1677_s21 }
 0x241   :  { %667 = vrot.lane.b32.xlu0 %v2003_v36, %s1678_s22 }
 0x243   :  { %665 = vrot.lane.b32.xlu1 %v2014_v50, %s1678_s22 }
 0x245   :  { %671 = vrot.lane.b32.xlu0 %v2022_v54, %s1678_s22 }
 0x247   :  { %669 = vrot.lane.b32.xlu1 %v2027_v55, %s1678_s22 }
 0x29a   :  { %v612_v15 = vpop.permute.xlu0 %611 }
 0x29d   :  { %v610_v16 = vpop.permute.xlu1 %609 }
 0x29e   :  { %v619_v4 = vsel %vm385_vm1, %v610_v16, %v612_v15 }
 0x29f   :  { %v616_v19 = vpop.permute.xlu0 %615  ;;  %v621_v14 = vsel %vm2471_vm13, %v619_v4, 0.0  ;;  %vm2484_vm13 = vcmp.lt.s32.totalorder %v1797_v24, 2 }
 0x2a0   :  { %v620_v11 = vsel %vm385_vm1, %v616_v19, %v610_v16 }
 0x2a1   :  { %v614_v20 = vpop.permute.xlu1 %613 }
 0x2a2   :  { %v618_v62 = vsel %vm385_vm1, %v612_v15, %v614_v20  ;;  %v617_v5 = vsel %vm385_vm1, %v614_v20, %v616_v19 }
 0x2a3   :  { %v628_v47 = vpop.permute.xlu0 %627  ;;  %v622_v8 = vsel %vm314_vm14, %v618_v62, 0.0  ;;  %v623_v17 = vsel %vm2481_vm3, %v617_v5, 0.0  ;;  %vm2486_vm3 = vcmp.ge.s32.totalorder %v1818_v40, 2 }
 0x2a5   :  { %v626_v56 = vpop.permute.xlu1 %625 }
 0x2a6   :  { %v635_v60 = vsel %vm410_vm5, %v626_v56, %v628_v47 }
 0x2a7   :  { %v632_v57 = vpop.permute.xlu0 %631  ;;  %v638_v3 = vsel %vm2470_vm6, %v635_v60, 0.0  ;;  %vm2482_vm6 = vcmp.ge.s32.totalorder %v1815_v39, 1 }
 0x2a8   :  { %v636_v63 = vsel %vm410_vm5, %v632_v57, %v626_v56  ;;  %v642_v12 = vmax.f32 %v622_v8, %v638_v3 }
 0x2a9   :  { %v630_v58 = vpop.permute.xlu1 %629  ;;  %v637_v9 = vsel %vm2480_vm0, %v636_v63, 0.0  ;;  %vm2483_vm0 = vcmp.lt.s32.totalorder %v1815_v39, 15 }
 0x2aa   :  { %v634_v1 = vsel %vm410_vm5, %v628_v47, %v630_v58  ;;  %v633_v6 = vsel %vm410_vm5, %v630_v58, %v632_v57  ;;  %v641_v22 = vmax.f32 %v621_v14, %v637_v9  ;;  %v624_v27 = vsel %vm2483_vm0, %v620_v11, 0.0  ;;  %vm2487_vm0 = vmmov %vm2484_vm13 }
 0x2ab   :  { %v652_v59 = vpop.permute.xlu0 %651  ;;  %v639_v10 = vsel %vm2473_vm4, %v634_v1, 0.0  ;;  %v640_v18 = vsel %vm2482_vm6, %v633_v6, 0.0  ;;  %v646_v30 = vmax.f32 %v2003_v36, %v642_v12  ;;  %vm2485_vm6 = vcmp.lt.s32.totalorder %v1818_v40, 14 }
 0x2ac   :  { %v643_v23 = vmax.f32 %v623_v17, %v639_v10  ;;  %v644_v31 = vmax.f32 %v624_v27, %v640_v18  ;;  %v645_v36 = vmax.f32 %v2014_v50, %v641_v22  ;;  %vm2493_vm4 = vcmp.lt.s32.totalorder %v1812_v38, 14 }
 0x2ad   :  { %v650_v61 = vpop.permute.xlu1 %649 }
 0x2ae   :  { %v659_v28 = vsel %vm2472_vm9, %v650_v61, %v652_v59  ;;  %v647_v44 = vmax.f32 %v2027_v55, %v643_v23  ;;  %v648_v56 = vmax.f32 %v2022_v54, %v644_v31  ;;  %v929_v54 = vld [vmem:[#allocation5] sm:$0xff] }
 0x2af   :  { %v656_v2 = vpop.permute.xlu0 %655 }
 0x2b0   :  { %v660_v43 = vsel %vm2472_vm9, %v656_v2, %v650_v61 }
 0x2b1   :  { %v654_v7 = vpop.permute.xlu1 %653 }
 0x2b2   :  { %v658_v21 = vsel %vm2472_vm9, %v652_v59, %v654_v7  ;;  %v657_v46 = vsel %vm2472_vm9, %v654_v7, %v656_v2  ;;  %vm2491_vm9 = vmmov %vm2487_vm0 }
 0x2b3   :  { %v668_v13 = vpop.permute.xlu0 %667  ;;  %v662_v26 = vsel %vm2485_vm6, %v658_v21, 0.0  ;;  %vm2489_vm6 = vcmp.ge.s32.totalorder %v1821_v41, 2  ;;  %v663_v55 = vsel %vm2493_vm4, %v657_v46, 0.0  ;;  %vm2496_vm4 = vcmask 64512  }
 0x2b4   :  { %1562 = vmatmul.mubr.msk.f32.vlgmr.msra.gmra.mrb[2].mxu0 %vm2496_vm4, %v929_v54 }
 0x2b5   :  { %v666_v25 = vpop.permute.xlu1 %665  ;;  %1291 = vmatprep.mubr.f32.mxu0 %v1673_v0 }
 0x2b6   :  { %v675_v29 = vsel %vm2484_vm13, %v666_v25, %v668_v13  ;;  %vm2488_vm13 = vcmp.lt.s32.totalorder %v1821_v41, 14 }
 0x2b7   :  { %v678_v37 = vsel %vm2486_vm3, %v675_v29, 0.0  ;;  %v672_v42 = vpop.permute.xlu0 %671  ;;  %v661_v51 = vsel %vm2488_vm13, %v659_v28, 0.0  ;;  %vm2490_vm3 = vmmov %vm2487_vm0  ;;  %vm2494_vm13 = vcmp.ge.s32.totalorder %v1812_v38, 2 }
 0x2b8   :  { %v682_v48 = vmax.f32 %v662_v26, %v678_v37  ;;  %v676_v49 = vsel %vm2487_vm0, %v672_v42, %v666_v25  ;;  %vm2492_vm0 = vcmp.lt.s32.totalorder %v1815_v39, 14 }
 0x2b9   :  { %v677_v45 = vsel %vm2489_vm6, %v676_v49, 0.0  ;;  %v670_v52 = vpop.permute.xlu1 %669  ;;  %v664_v50 = vsel %vm2492_vm0, %v660_v43, 0.0  ;;  %vm2495_vm6 = vcmp.ge.s32.totalorder %v1815_v39, 2  ;;  %vm2499_vm0 = vcmp.ge.s32.totalorder %v1809_v35, 16 }
 0x2ba   :  { %v2122_v53 = vmax.f32 %v646_v30, %v682_v48  ;;  %v681_v15 = vmax.f32 %v661_v51, %v677_v45  ;;  %v673_v16 = vsel %vm2490_vm3, %v670_v52, %v672_v42  ;;  %v674_v19 = vsel %vm2491_vm9, %v668_v13, %v670_v52  ;;  %vm2497_vm9 = vmmov %vm2496_vm4 }
 0x2bb   :  { %v679_v20 = vsel %vm2494_vm13, %v674_v19, 0.0  ;;  %v680_v47 = vsel %vm2495_vm6, %v673_v16, 0.0  ;;  %1563 = vmatmul.mubr.msk.f32.vlgmr.msra.gmra.mrb[2].mxu1 %vm2497_vm9, %v929_v54  ;;  %vm2498_vm3 = vcmp.lt.s32.totalorder %v1806_v34, 240  ;;  %vm2500_vm13 = vcmp.lt.s32.totalorder %v1806_v34, 224 }
 0x2bc   :  { %v2137_v57 = vmax.f32 %v645_v36, %v681_v15  ;;  %v683_v58 = vmax.f32 %v663_v55, %v679_v20  ;;  %v684_v59 = vmax.f32 %v664_v50, %v680_v47  ;;  %691 = vrot.lane.b32.xlu0 %v2122_v53, %s1679_s23  ;;  %1362 = vmatprep.mubr.f32.mxu1 %v1673_v0  ;;  %vm2501_vm6 = vcmp.lt.s32.totalorder %v1804_v33, 224 }
 0x2bd   :  { %vm2502_vm4 = vcmp.ge.s32.totalorder %v1802_v32, 32  ;;  %vm2503_vm9 = vcmp.ge.s32.totalorder %v1818_v40, 1 }
 0x2be   :  { %v2141_v60 = vmax.f32 %v647_v44, %v683_v58  ;;  %v2143_v61 = vmax.f32 %v648_v56, %v684_v59  ;;  %689 = vrot.lane.b32.xlu1 %v2137_v57, %s1679_s23 }
 0x2c0   :  { %695 = vrot.lane.b32.xlu0 %v2143_v61, %s1679_s23 }
 0x2c2   :  { %693 = vrot.lane.b32.xlu1 %v2141_v60, %s1679_s23 }
 0x2c4   :  { %707 = vrot.lane.b32.xlu0 %v2122_v53, %s1680_s24 }
 0x2c6   :  { %705 = vrot.lane.b32.xlu1 %v2137_v57, %s1680_s24 }
 0x2c8   :  { %711 = vrot.lane.b32.xlu0 %v2143_v61, %s1680_s24 }
 0x2ca   :  { %709 = vrot.lane.b32.xlu1 %v2141_v60, %s1680_s24 }
 0x2cc   :  { %731 = vrot.lane.b32.xlu0 %v2122_v53, %s1681_s25 }
 0x2ce   :  { %729 = vrot.lane.b32.xlu1 %v2137_v57, %s1681_s25 }
 0x2d0   :  { %735 = vrot.lane.b32.xlu0 %v2143_v61, %s1681_s25 }
 0x2d2   :  { %733 = vrot.lane.b32.xlu1 %v2141_v60, %s1681_s25 }
 0x2d4   :  { %747 = vrot.lane.b32.xlu0 %v2122_v53, %s1682_s26 }
 0x2d6   :  { %745 = vrot.lane.b32.xlu1 %v2137_v57, %s1682_s26 }
 0x2d8   :  { %751 = vrot.lane.b32.xlu0 %v2143_v61, %s1682_s26 }
 0x2da   :  { %749 = vrot.lane.b32.xlu1 %v2141_v60, %s1682_s26 }
 0x32e   :  { %v692_v62 = vpop.permute.xlu0 %691 }
 0x330   :  { %v690_v63 = vpop.permute.xlu1 %689 }
 0x331   :  { %v699_v27 = vsel %vm501_vm8, %v690_v63, %v692_v62 }
 0x332   :  { %v696_v1 = vpop.permute.xlu0 %695 }
 0x333   :  { %v700_v21 = vsel %vm501_vm8, %v696_v1, %v690_v63 }
 0x334   :  { %v694_v2 = vpop.permute.xlu1 %693  ;;  %v704_v26 = vsel %vm348_vm10, %v700_v21, 0.0 }
 0x335   :  { %v698_v9 = vsel %vm501_vm8, %v692_v62, %v694_v2  ;;  %v697_v37 = vsel %vm501_vm8, %v694_v2, %v696_v1 }
 0x336   :  { %v708_v3 = vpop.permute.xlu0 %707  ;;  %v702_v14 = vsel %vm2498_vm3, %v698_v9, 0.0  ;;  %vm2504_vm3 = vcmp.ge.s32.totalorder %v1821_v41, 1 }
 0x338   :  { %v706_v4 = vpop.permute.xlu1 %705 }
 0x339   :  { %v715_v12 = vsel %vm526_vm2, %v706_v4, %v708_v3 }
 0x33a   :  { %v712_v5 = vpop.permute.xlu0 %711  ;;  %v722_v22 = vmax.f32 %v702_v14, %v715_v12 }
 0x33b   :  { %v716_v10 = vsel %vm526_vm2, %v712_v5, %v706_v4 }
 0x33c   :  { %v710_v6 = vpop.permute.xlu1 %709  ;;  %v717_v17 = vsel %vm2499_vm0, %v716_v10, 0.0  ;;  %v726_v46 = vmax.f32 %v2122_v53, %v722_v22  ;;  %vm2506_vm0 = vcmp.ge.s32.totalorder %v1815_v39, 1 }
 0x33d   :  { %v714_v18 = vsel %vm526_vm2, %v708_v3, %v710_v6  ;;  %v713_v28 = vsel %vm526_vm2, %v710_v6, %v712_v5  ;;  %v721_v29 = vmax.f32 %v699_v27, %v717_v17 }
 0x33e   :  { %v732_v7 = vpop.permute.xlu0 %731  ;;  %v719_v30 = vsel %vm363_vm15, %v714_v18, 0.0  ;;  %v724_v48 = vmax.f32 %v704_v26, %v713_v28 }
 0x33f   :  { %v723_v51 = vmax.f32 %v697_v37, %v719_v30  ;;  %v725_v52 = vmax.f32 %v2137_v57, %v721_v29 }
 0x340   :  { %v730_v8 = vpop.permute.xlu1 %729  ;;  %v728_v56 = vmax.f32 %v2143_v61, %v724_v48 }
 0x341   :  { %v739_v15 = vsel %vm559_vm11, %v730_v8, %v732_v7  ;;  %v727_v54 = vmax.f32 %v2141_v60, %v723_v51 }
 0x342   :  { %v736_v11 = vpop.permute.xlu0 %735 }
 0x343   :  { %v740_v49 = vsel %vm559_vm11, %v736_v11, %v730_v8 }
 0x344   :  { %v734_v13 = vpop.permute.xlu1 %733  ;;  %v744_v50 = vsel %vm2501_vm6, %v740_v49, 0.0  ;;  %vm2509_vm6 = vcmp.lt.s32.totalorder %v1815_v39, 15 }
 0x345   :  { %v738_v23 = vsel %vm559_vm11, %v732_v7, %v734_v13  ;;  %v737_v57 = vsel %vm559_vm11, %v734_v13, %v736_v11 }
 0x346   :  { %v748_v25 = vpop.permute.xlu0 %747  ;;  %v742_v42 = vsel %vm2500_vm13, %v738_v23, 0.0  ;;  %vm2508_vm13 = vcmp.lt.s32.totalorder %v1797_v24, 126 }
 0x348   :  { %v746_v31 = vpop.permute.xlu1 %745 }
 0x349   :  { %v755_v43 = vsel %vm584_vm7, %v746_v31, %v748_v25 }
 0x34a   :  { %v762_v36 = vmax.f32 %v742_v42, %v755_v43  ;;  %v752_v44 = vpop.permute.xlu0 %751 }
 0x34b   :  { %v756_v45 = vsel %vm584_vm7, %v752_v44, %v746_v31 }
 0x34c   :  { %v2217_v16 = vmax.f32 %v726_v46, %v762_v36  ;;  %v757_v53 = vsel %vm369_vm12, %v756_v45, 0.0  ;;  %v750_v19 = vpop.permute.xlu1 %749 }
 0x34d   :  { %v761_v55 = vmax.f32 %v739_v15, %v757_v53  ;;  %v753_v20 = vsel %vm584_vm7, %v750_v19, %v752_v44  ;;  %v754_v47 = vsel %vm584_vm7, %v748_v25, %v750_v19 }
 0x34e   :  { %v759_v58 = vsel %vm2502_vm4, %v754_v47, 0.0  ;;  %v764_v59 = vmax.f32 %v744_v50, %v753_v20  ;;  %771 = vrot.lane.b32.xlu0 %v2217_v16, %s1675_s1  ;;  %1227 = vmatprep.subr.mxu0 %v2217_v16  ;;  %vm2511_vm4 = vmmov %vm2508_vm13 }
 0x34f   :  { %v2236_v62 = vmax.f32 %v725_v52, %v761_v55  ;;  %v763_v63 = vmax.f32 %v737_v57, %v759_v58 }
 0x350   :  { %v2238_v1 = vmax.f32 %v728_v56, %v764_v59 }
 0x351   :  { %v2240_v61 = vmax.f32 %v727_v54, %v763_v63  ;;  %769 = vrot.lane.b32.xlu1 %v2236_v62, %s1675_s1  ;;  %1228 = vmatpush1.msra.mxu0 %v2236_v62 }
 0x352   :  { %775 = vrot.lane.b32.xlu0 %v2238_v1, %s1675_s1  ;;  %1298 = vmatprep.subr.mxu1 %v2238_v1 }
 0x353   :  { %1299 = vmatpush1.msra.mxu1 %v2240_v61 }
 0x355   :  { %773 = vrot.lane.b32.xlu1 %v2240_v61, %s1675_s1 }
 0x356   :  { %787 = vrot.lane.b32.xlu0 %v2217_v16, %s1676_s2 }
 0x359   :  { %785 = vrot.lane.b32.xlu1 %v2236_v62, %s1676_s2 }
 0x35a   :  { %791 = vrot.lane.b32.xlu0 %v2238_v1, %s1676_s2 }
 0x35d   :  { %789 = vrot.lane.b32.xlu1 %v2240_v61, %s1676_s2 }
 0x35e   :  { %811 = vrot.lane.b32.xlu0 %v2217_v16, %s1677_s21 }
 0x361   :  { %809 = vrot.lane.b32.xlu1 %v2236_v62, %s1677_s21 }
 0x362   :  { %815 = vrot.lane.b32.xlu0 %v2238_v1, %s1677_s21 }
 0x365   :  { %813 = vrot.lane.b32.xlu1 %v2240_v61, %s1677_s21 }
 0x366   :  { %827 = vrot.lane.b32.xlu0 %v2217_v16, %s1678_s22 }
 0x369   :  { %825 = vrot.lane.b32.xlu1 %v2236_v62, %s1678_s22 }
 0x36a   :  { %831 = vrot.lane.b32.xlu0 %v2238_v1, %s1678_s22 }
 0x36d   :  { %829 = vrot.lane.b32.xlu1 %v2240_v61, %s1678_s22 }
 0x3c0   :  { %v772_v60 = vpop.permute.xlu0 %771 }
 0x3c3   :  { %v770_v2 = vpop.permute.xlu1 %769 }
 0x3c4   :  { %v776_v3 = vpop.permute.xlu0 %775  ;;  %v779_v22 = vsel %vm385_vm1, %v770_v2, %v772_v60 }
 0x3c5   :  { %v780_v27 = vsel %vm385_vm1, %v776_v3, %v770_v2 }
 0x3c6   :  { %v784_v46 = vsel %vm2509_vm6, %v780_v27, 0.0 }
 0x3c7   :  { %v774_v4 = vpop.permute.xlu1 %773 }
 0x3c8   :  { %v788_v5 = vpop.permute.xlu0 %787  ;;  %v778_v12 = vsel %vm385_vm1, %v772_v60, %v774_v4  ;;  %v777_v28 = vsel %vm385_vm1, %v774_v4, %v776_v3  ;;  %vm2510_vm1 = vcmp.lt.s32.totalorder %v1812_v38, 15 }
 0x3c9   :  { %v782_v23 = vsel %vm314_vm14, %v778_v12, 0.0  ;;  %vm2507_vm14 = vcmp.lt.s32.totalorder %v1821_v41, 15  ;;  %v783_v48 = vsel %vm2510_vm1, %v777_v28, 0.0  ;;  %vm2519_vm1 = vcmp.ge.s32.totalorder %v1821_v41, 2 }
 0x3ca   :  { %v781_v42 = vsel %vm2507_vm14, %v779_v22, 0.0 }
 0x3cb   :  { %v786_v6 = vpop.permute.xlu1 %785 }
 0x3cc   :  { %v792_v7 = vpop.permute.xlu0 %791  ;;  %v795_v10 = vsel %vm410_vm5, %v786_v6, %v788_v5 }
 0x3cd   :  { %v798_v14 = vsel %vm2503_vm9, %v795_v10, 0.0  ;;  %v796_v17 = vsel %vm410_vm5, %v792_v7, %v786_v6  ;;  %vm2512_vm9 = vcmp.lt.s32.totalorder %v1797_v24, 2 }
 0x3ce   :  { %v802_v29 = vmax.f32 %v782_v23, %v798_v14  ;;  %v797_v30 = vsel %vm2504_vm3, %v796_v17, 0.0  ;;  %vm2513_vm3 = vmmov %vm2511_vm4 }
 0x3cf   :  { %v790_v8 = vpop.permute.xlu1 %789  ;;  %v801_v49 = vmax.f32 %v781_v42, %v797_v30  ;;  %vm2516_vm14 = vmmov %vm2512_vm9 }
 0x3d0   :  { %v812_v9 = vpop.permute.xlu0 %811  ;;  %v793_v18 = vsel %vm410_vm5, %v790_v8, %v792_v7  ;;  %v794_v21 = vsel %vm410_vm5, %v788_v5, %v790_v8  ;;  %vm2505_vm5 = vcmp.ge.s32.totalorder %v1812_v38, 1  ;;  %v806_v51 = vmax.f32 %v2217_v16, %v802_v29  ;;  %vm2518_vm6 = vmmov %vm2513_vm3 }
 0x3d1   :  { %v799_v26 = vsel %vm2505_vm5, %v794_v21, 0.0  ;;  %v800_v37 = vsel %vm2506_vm0, %v793_v18, 0.0  ;;  %vm2514_vm5 = vcmp.lt.s32.totalorder %v1818_v40, 14  ;;  %vm2515_vm0 = vcmp.ge.s32.totalorder %v1818_v40, 2 }
 0x3d2   :  { %v803_v45 = vmax.f32 %v783_v48, %v799_v26  ;;  %v804_v52 = vmax.f32 %v784_v46, %v800_v37  ;;  %v805_v58 = vmax.f32 %v2236_v62, %v801_v49 }
 0x3d3   :  { %v810_v11 = vpop.permute.xlu1 %809 }
 0x3d4   :  { %v816_v13 = vpop.permute.xlu0 %815  ;;  %v819_v36 = vsel %vm2511_vm4, %v810_v11, %v812_v9  ;;  %vm2520_vm4 = vcmp.lt.s32.totalorder %v1815_v39, 14  ;;  %v807_v5 = vmax.f32 %v2240_v61, %v803_v45  ;;  %v808_v6 = vmax.f32 %v2238_v1, %v804_v52 }
 0x3d5   :  { %v820_v19 = vsel %vm2513_vm3, %v816_v13, %v810_v11  ;;  %vm2521_vm3 = vmmov %vm2512_vm9 }
 0x3d6   :  { %v824_v40 = vsel %vm2520_vm4, %v820_v19, 0.0  ;;  %vm2528_vm4 = vcmp.lt.s32.totalorder %v1806_v34, 240 }
 0x3d7   :  { %v814_v25 = vpop.permute.xlu1 %813 }
 0x3d8   :  { %v828_v31 = vpop.permute.xlu0 %827  ;;  %v818_v43 = vsel %vm2508_vm13, %v812_v9, %v814_v25  ;;  %vm2517_vm13 = vcmp.lt.s32.totalorder %v1821_v41, 14  ;;  %v817_v47 = vsel %vm2518_vm6, %v814_v25, %v816_v13 }
 0x3d9   :  { %v822_v50 = vsel %vm2514_vm5, %v818_v43, 0.0  ;;  %v821_v16 = vsel %vm2517_vm13, %v819_v36, 0.0  ;;  %vm2522_vm5 = vcmp.lt.s32.totalorder %v1812_v38, 14  ;;  %vm2525_vm13 = vcmask 64512  }
 0x3da   :  { %v823_v3 = vsel %vm2522_vm5, %v817_v47, 0.0  ;;  %vm2526_vm6 = vmmov %vm2525_vm13 }
 0x3db   :  { %v826_v44 = vpop.permute.xlu1 %825 }
 0x3dc   :  { %v835_v15 = vsel %vm2512_vm9, %v826_v44, %v828_v31  ;;  %v832_v53 = vpop.permute.xlu0 %831 }
 0x3dd   :  { %v838_v55 = vsel %vm2515_vm0, %v835_v15, 0.0  ;;  %v836_v20 = vsel %vm2516_vm14, %v832_v53, %v826_v44  ;;  %vm2523_vm0 = vcmp.ge.s32.totalorder %v1812_v38, 2  ;;  %vm2524_vm14 = vcmp.ge.s32.totalorder %v1815_v39, 2  ;;  %v1223_v38 = vld [vmem:[#allocation5 + $0x10] sm:$0xff] }
 0x3de   :  { %v842_v56 = vmax.f32 %v822_v50, %v838_v55  ;;  %v837_v57 = vsel %vm2519_vm1, %v836_v20, 0.0  ;;  %1564 = vmatmul.mubr.msk.f32.vlgmr.msra.gmra.mrb[2].mxu0 %vm2525_vm13, %v1223_v38  ;;  %1565 = vmatmul.mubr.msk.f32.vlgmr.msra.gmra.mrb[2].mxu1 %vm2526_vm6, %v1223_v38  ;;  %vm2527_vm1 = vcmp.ge.s32.totalorder %v1809_v35, 16 }
 0x3df   :  { %v841_v59 = vmax.f32 %v821_v16, %v837_v57  ;;  %v830_v54 = vpop.permute.xlu1 %829  ;;  %1442 = vmatprep.mubr.f32.mxu0 %v1673_v0  ;;  %1513 = vmatprep.mubr.f32.mxu1 %v1673_v0  ;;  %v1524_v0 = vld [vmem:[%s2453_s4] sm:$0xff]  ;;  %s1683_s4 = smov [#allocation7]  }
 0x3e0   :  { %v2331_v63 = vmax.f32 %v806_v51, %v842_v56  ;;  %v833_v60 = vsel %vm2512_vm9, %v830_v54, %v832_v53  ;;  %v834_v2 = vsel %vm2521_vm3, %v828_v31, %v830_v54  ;;  %vm2529_vm9 = vcmp.lt.s32.totalorder %v1806_v34, 224  ;;  %s1548_s29 = sshll.u32 %s1683_s4, 4  ;;  %s1549_s29 = int_to_ptr.vmem [resolvable:$true] %s1548_s29 }
 0x3e1   :  { %v2339_v41 = vmax.f32 %v805_v58, %v841_v59  ;;  %v839_v62 = vsel %vm2523_vm0, %v834_v2, 0.0  ;;  %v840_v4 = vsel %vm2524_vm14, %v833_v60, 0.0  ;;  %s1641_s30 = scalar_lea.vmem %s1549_s29, 512  ;;  %p1646_p3 = scmp.lt.s32.totalorder %s1549_s29, %s1549_s29 }
 0x3e2   :  { %v843_v7 = vmax.f32 %v823_v3, %v839_v62  ;;  %v844_v8 = vmax.f32 %v824_v40, %v840_v4  ;;  %851 = vrot.lane.b32.xlu0 %v2331_v63, %s1679_s23  ;;  %p1642_p2 = scmp.ne.s32.totalorder %s1549_s29, %s1641_s30  ;;  %p1647_p4 = scmp.lt.s32.totalorder %s1641_s30, %s1641_s30 }
 0x3e3   :  { %849 = vrot.lane.b32.xlu1 %v2339_v41, %s1679_s23 }
 0x3e4   :  { %v2351_v9 = vmax.f32 %v807_v5, %v843_v7  ;;  %v848_v10 = vmax.f32 %v808_v6, %v844_v8  ;;  %v1374_v7 = vld [vmem:[#allocation5 + $0x18] sm:$0xff]  ;;  %p1648_p5 = por %p1647_p4, %p1646_p3 }
 0x3e6   :  { %855 = vrot.lane.b32.xlu0 %v848_v10, %s1679_s23  ;;  %p1649_p6 = pnand %p1648_p5, %p1642_p2 }
 0x3e7   :  { %853 = vrot.lane.b32.xlu1 %v2351_v9, %s1679_s23 }
 0x3ea   :  { %867 = vrot.lane.b32.xlu0 %v2331_v63, %s1680_s24 }
 0x3eb   :  { %865 = vrot.lane.b32.xlu1 %v2339_v41, %s1680_s24 }
 0x3ee   :  { %871 = vrot.lane.b32.xlu0 %v848_v10, %s1680_s24 }
 0x3ef   :  { %869 = vrot.lane.b32.xlu1 %v2351_v9, %s1680_s24 }
 0x3f2   :  { %891 = vrot.lane.b32.xlu0 %v2331_v63, %s1681_s25 }
 0x3f3   :  { %889 = vrot.lane.b32.xlu1 %v2339_v41, %s1681_s25 }
 0x3f6   :  { %895 = vrot.lane.b32.xlu0 %v848_v10, %s1681_s25 }
 0x3f7   :  { %893 = vrot.lane.b32.xlu1 %v2351_v9, %s1681_s25 }
 0x3fa   :  { %907 = vrot.lane.b32.xlu0 %v2331_v63, %s1682_s26 }
 0x3fb   :  { %905 = vrot.lane.b32.xlu1 %v2339_v41, %s1682_s26 }
 0x3fe   :  { %911 = vrot.lane.b32.xlu0 %v848_v10, %s1682_s26 }
 0x3ff   :  { %909 = vrot.lane.b32.xlu1 %v2351_v9, %s1682_s26 }
 0x403   :  { %1527 = vperm.xlu1 %1596, %v1524_v0  }
 0x454   :  { %v852_v39 = vpop.permute.xlu0 %851 }
 0x455   :  { %v850_v1 = vpop.permute.xlu1 %849 }
 0x456   :  { %v859_v42 = vsel %vm501_vm8, %v850_v1, %v852_v39 }
 0x458   :  { %v856_v61 = vpop.permute.xlu0 %855 }
 0x459   :  { %v854_v11 = vpop.permute.xlu1 %853  ;;  %v860_v28 = vsel %vm501_vm8, %v856_v61, %v850_v1 }
 0x45a   :  { %v858_v23 = vsel %vm501_vm8, %v852_v39, %v854_v11  ;;  %v864_v48 = vsel %vm348_vm10, %v860_v28, 0.0  ;;  %v857_v53 = vsel %vm501_vm8, %v854_v11, %v856_v61  ;;  %vm2530_vm10 = vcmp.lt.s32.totalorder %v1804_v33, 224 }
 0x45b   :  { %v862_v31 = vsel %vm2528_vm4, %v858_v23, 0.0 }
 0x45c   :  { %v868_v12 = vpop.permute.xlu0 %867 }
 0x45d   :  { %v866_v13 = vpop.permute.xlu1 %865 }
 0x45e   :  { %v875_v25 = vsel %vm526_vm2, %v866_v13, %v868_v12 }
 0x45f   :  { %v882_v43 = vmax.f32 %v862_v31, %v875_v25 }
 0x460   :  { %v872_v14 = vpop.permute.xlu0 %871 }
 0x461   :  { %v870_v17 = vpop.permute.xlu1 %869  ;;  %v876_v22 = vsel %vm526_vm2, %v872_v14, %v866_v13  ;;  %v886_v19 = vmax.f32 %v2331_v63, %v882_v43 }
 0x462   :  { %v877_v29 = vsel %vm2527_vm1, %v876_v22, 0.0  ;;  %v874_v26 = vsel %vm526_vm2, %v868_v12, %v870_v17  ;;  %v873_v37 = vsel %vm526_vm2, %v870_v17, %v872_v14 }
 0x463   :  { %v881_v49 = vmax.f32 %v859_v42, %v877_v29  ;;  %v879_v44 = vsel %vm363_vm15, %v874_v26, 0.0  ;;  %v884_v51 = vmax.f32 %v864_v48, %v873_v37  ;;  %vm2531_vm15 = vcmp.ge.s32.totalorder %v1802_v32, 32 }
 0x464   :  { %v892_v18 = vpop.permute.xlu0 %891  ;;  %v883_v20 = vmax.f32 %v857_v53, %v879_v44 }
 0x465   :  { %v890_v21 = vpop.permute.xlu1 %889  ;;  %v885_v16 = vmax.f32 %v2339_v41, %v881_v49  ;;  %v888_v56 = vmax.f32 %v848_v10, %v884_v51 }
 0x466   :  { %v899_v34 = vsel %vm559_vm11, %v890_v21, %v892_v18  ;;  %v887_v33 = vmax.f32 %v2351_v9, %v883_v20 }
 0x468   :  { %v896_v27 = vpop.permute.xlu0 %895 }
 0x469   :  { %v894_v30 = vpop.permute.xlu1 %893  ;;  %v900_v50 = vsel %vm559_vm11, %v896_v27, %v890_v21 }
 0x46a   :  { %v898_v46 = vsel %vm559_vm11, %v892_v18, %v894_v30  ;;  %v904_v54 = vsel %vm2530_vm10, %v900_v50, 0.0  ;;  %v897_v2 = vsel %vm559_vm11, %v894_v30, %v896_v27 }
 0x46b   :  { %v902_v52 = vsel %vm2529_vm9, %v898_v46, 0.0 }
 0x46c   :  { %v908_v36 = vpop.permute.xlu0 %907 }
 0x46d   :  { %v906_v45 = vpop.permute.xlu1 %905 }
 0x46e   :  { %v915_v15 = vsel %vm584_vm7, %v906_v45, %v908_v36 }
 0x46f   :  { %v922_v55 = vmax.f32 %v902_v52, %v915_v15 }
 0x470   :  { %v912_v47 = vpop.permute.xlu0 %911 }
 0x471   :  { %v910_v57 = vpop.permute.xlu1 %909  ;;  %v916_v58 = vsel %vm584_vm7, %v912_v47, %v906_v45  ;;  %v926_v59 = vmax.f32 %v886_v19, %v922_v55 }
 0x472   :  { %v914_v40 = vsel %vm584_vm7, %v908_v36, %v910_v57  ;;  %v913_v63 = vsel %vm584_vm7, %v910_v57, %v912_v47  ;;  %v917_v60 = vsel %vm369_vm12, %v916_v58, 0.0  ;;  %vm2532_vm7 = vmmov %vm2526_vm6 }
 0x473   :  { %v919_v3 = vsel %vm2531_vm15, %v914_v40, 0.0  ;;  %v921_v41 = vmax.f32 %v899_v34, %v917_v60  ;;  %v924_v62 = vmax.f32 %v904_v54, %v913_v63  ;;  %1378 = vmatprep.subr.mxu0 %v926_v59  ;;  %vm2533_vm12 = vmmov %vm2526_vm6 }
 0x474   :  { %v923_v4 = vmax.f32 %v897_v2, %v919_v3 }
 0x475   :  { %v925_v5 = vmax.f32 %v885_v16, %v921_v41  ;;  %v928_v6 = vmax.f32 %v888_v56, %v924_v62 }
 0x476   :  { %v927_v8 = vmax.f32 %v887_v33, %v923_v4 }
 0x477   :  { %1449 = vmatprep.subr.mxu1 %v928_v6  ;;  %1379 = vmatpush1.msra.mxu0 %v925_v5 }
 0x478   :  { %1450 = vmatpush1.msra.mxu1 %v927_v8  ;;  %1566 = vmatmul.mubr.msk.f32.vlgmr.msra.gmra.mrb[2].mxu0 %vm2532_vm7, %v1374_v7 }
 0x479   :  { %1567 = vmatmul.mubr.msk.f32.vlgmr.msra.gmra.mrb[2].mxu1 %vm2533_vm12, %v1374_v7 }
 0x482   :  { %v1528_v24 = vpop.permute.xlu1 %1527 }
 0x54b   :  { %v1444_v32 = vpop.f32.mrb[2].mxu0 }
 0x54c   :  { %v1530_v35 = vadd.f32 %v1528_v24, %v1444_v32  ;;  %v1515_v10 = vpop.f32.mrb[2].mxu1  ;;  %v1446_v38 = vpop.f32.mrb[3].mxu0 }
 0x54d   :  { %v1532_v0 = vadd.f32 %v1528_v24, %v1515_v10  ;;  %v1531_v39 = vadd.f32 %v1528_v24, %v1446_v38  ;;  %v1517_v9 = vpop.f32.mrb[3].mxu1 }
 0x54e   :  { %v1534_v1 = vmax.f32 %v1530_v35, 0.0  ;;  %v1533_v61 = vadd.f32 %v1528_v24, %v1517_v9 }
 0x54f   :  { %v1536_v11 = vmax.f32 %v1532_v0, 0.0  ;;  %v1535_v12 = vmax.f32 %v1531_v39, 0.0 }
 0x550   :  { %1538 = vst [vmem:[#allocation7] sm:$0xff] %v1534_v1  ;;  %v1537_v13 = vmax.f32 %v1533_v61, 0.0 }
 0x551   :  { %1540 = vst [vmem:[#allocation7 + $0x10] sm:$0xff] %v1536_v11  ;;  %1539 = vst [vmem:[#allocation7 + $0x8] sm:$0xff] %v1535_v12 }
 0x552   :  { %1541 = vst [vmem:[#allocation7 + $0x18] sm:$0xff] %v1537_v13 }
 0x553   :  { %1652 = shalt.err (!%p1649_p6)
}
 0x554   :  { %s1653_s8 = scalar_lea.hbm %s2454_s5, 512 }
 0x555   :  { %p1654_p7 = scmp.ne.s32.totalorder %s2454_s5, %s1653_s8  ;;  %p1657_p8 = scmp.lt.u32.totalorder %s1653_s8, %s2454_s5 }
 0x557   :  { %p1659_p9 = pnand %p1657_p8, %p1654_p7 }
 0x559   :  { %1662 = shalt.err (!%p1659_p9)
}
 0x55a   :  { %1551 = dma.vmem_to_hbm [thread:$0]  %s1549_s29, 512, %s2454_s5, [#allocation4]  }
 0x55b   :  { %1667 = dma.done.wait [#allocation4], 512  }
 0x55c   :  { %1668 = vsyncadd [#allocation4], 4294966784 }
 0x55d   :  { %1555 = vsyncpa [#allocation3], 1 }
 0x55e   :  { %1556 = vsyncpa [#allocation6], 1 }
 0x55f   :  { %1557 = vsyncpa [#allocation4], 1 }

</bundles_post_ra>
